<compile_context>
chip_gen: v6e
topology: v6e:2x2x1
jax: 0.10.0
libtpu: 0.0.40
codegen_flags: <defaults>
</compile_context>

<pallas_src>
import functools
import math

import jax
import jax.numpy as jnp
from jax import lax
from jax.experimental import pallas as pl
from jax.experimental.pallas import tpu as pltpu


# ----------------------------------------------------------------------------
# Pallas kernels
# ----------------------------------------------------------------------------
def _layernorm(x, g, b, eps):
    # f32 math (v5e-safe); x: (rows, E), g/b: (1, E)
    mean = jnp.mean(x, axis=-1, keepdims=True)
    var = jnp.mean((x - mean) * (x - mean), axis=-1, keepdims=True)
    return (x - mean) * lax.rsqrt(var + eps) * g + b


def embed_kernel(tok_ref, emb_ref, pos_ref, o_ref, *, B, S):
    # tok: (B*S, 1) int32, emb: (V, E) f32, pos: (S, E) f32 -> out (B*S, E) f32
    tok = tok_ref[...]                                           # (M, 1) int32
    M = tok.shape[0]
    V = emb_ref.shape[0]
    vocab_iota = lax.broadcasted_iota(jnp.int32, (M, V), 1)
    onehot = (tok == vocab_iota).astype(jnp.float32)             # (M, V)
    x = jnp.dot(onehot, emb_ref[...], preferred_element_type=jnp.float32)  # (M, E)
    pos = pos_ref[...]                                           # (S, E)
    for b in range(B):                                           # fused positional add
        o_ref[b * S:(b + 1) * S, :] = x[b * S:(b + 1) * S, :] + pos


def block_kernel(x_ref, g1_ref, b1_ref, wqkv_ref, bqkv_ref, wo_ref, bo_ref,
                 g2_ref, b2_ref, w1_ref, bf1_ref, w2_ref, bf2_ref, o_ref,
                 *, S, H, Dh, eps):
    # One batch element per grid step: x block is (S, E).
    E = H * Dh
    x = x_ref[...]                                               # (S, E) f32

    # ---- pre-norm LN1 ----
    h = _layernorm(x, g1_ref[...], b1_ref[...], eps)

    # ---- fused QKV projection (bf16 operands, f32 accumulate) ----
    qkv = jnp.dot(h.astype(jnp.bfloat16), wqkv_ref[...],
                  preferred_element_type=jnp.float32) + bqkv_ref[...]      # (S, 3E)
    q = qkv[:, :E]
    k = qkv[:, E:2 * E]
    v = qkv[:, 2 * E:3 * E]

    # ---- causal multi-head attention (static unroll over heads) ----
    scale = 1.0 / math.sqrt(Dh)
    row = lax.broadcasted_iota(jnp.int32, (S, S), 0)
    col = lax.broadcasted_iota(jnp.int32, (S, S), 1)
    causal = col <= row
    head_outs = []
    for hh in range(H):
        qh = q[:, hh * Dh:(hh + 1) * Dh].astype(jnp.bfloat16)    # (S, Dh)
        kh = k[:, hh * Dh:(hh + 1) * Dh].astype(jnp.bfloat16)
        vh = v[:, hh * Dh:(hh + 1) * Dh].astype(jnp.bfloat16)
        s = lax.dot_general(qh, kh, (((1,), (1,)), ((), ())),
                            preferred_element_type=jnp.float32) * scale    # (S, S) f32
        s = jnp.where(causal, s, -1e30)                          # mask in f32
        m = jnp.max(s, axis=-1, keepdims=True)
        p = jnp.exp(s - m)
        l = jnp.sum(p, axis=-1, keepdims=True)
        oh = jnp.dot(p.astype(jnp.bfloat16), vh,
                     preferred_element_type=jnp.float32)         # (S, Dh) f32
        head_outs.append(oh * pl.reciprocal(l, approx=True))     # EUP reciprocal
    attn = jnp.concatenate(head_outs, axis=-1)                   # (S, E) f32

    # ---- output projection + residual ----
    o = jnp.dot(attn.astype(jnp.bfloat16), wo_ref[...],
                preferred_element_type=jnp.float32) + bo_ref[...]
    x = x + o

    # ---- pre-norm LN2 + FFN (w1 -> GELU -> w2) + residual ----
    h2 = _layernorm(x, g2_ref[...], b2_ref[...], eps)
    f = jnp.dot(h2.astype(jnp.bfloat16), w1_ref[...],
                preferred_element_type=jnp.float32) + bf1_ref[...]
    # TODO(synk): tanh-approx GELU; PyTorch nn.GELU() default is the exact erf form.
    f = 0.5 * f * (1.0 + jnp.tanh(0.7978845608028654 * (f + 0.044715 * f * f * f)))
    f2 = jnp.dot(f.astype(jnp.bfloat16), w2_ref[...],
                 preferred_element_type=jnp.float32) + bf2_ref[...]
    o_ref[...] = x + f2


def lm_head_kernel(x_ref, g_ref, b_ref, w_ref, bh_ref, o_ref, *, eps):
    # Fused final LayerNorm + vocab projection; one (tm, tn) output tile per grid step.
    h = _layernorm(x_ref[...], g_ref[...], b_ref[...], eps)
    y = jnp.dot(h.astype(jnp.bfloat16), w_ref[...],
                preferred_element_type=jnp.float32) + bh_ref[...]
    o_ref[...] = y


# ----------------------------------------------------------------------------
# pallas_call wrappers
# ----------------------------------------------------------------------------
def _full2d(shape):
    return pl.BlockSpec(shape, lambda *_: (0, 0))


def embed(tokens, word_emb, pos_enc):
    B, S = tokens.shape
    V, E = word_emb.shape
    M = B * S
    return pl.pallas_call(
        functools.partial(embed_kernel, B=B, S=S),
        out_shape=jax.ShapeDtypeStruct((M, E), jnp.float32),
        grid=(1,),
        in_specs=[
            pl.BlockSpec((M, 1), lambda i: (0, 0)),
            pl.BlockSpec((V, E), lambda i: (0, 0)),
            pl.BlockSpec((S, E), lambda i: (0, 0)),
        ],
        out_specs=pl.BlockSpec((M, E), lambda i: (0, 0)),
    )(tokens.reshape(M, 1).astype(jnp.int32), word_emb, pos_enc[:S])


def transformer_block(x2d, lp, *, B, S, H, eps=1e-5):
    M, E = x2d.shape
    Dh = E // H
    F = lp["w1"].shape[1]
    kern = functools.partial(block_kernel, S=S, H=H, Dh=Dh, eps=eps)
    return pl.pallas_call(
        kern,
        out_shape=jax.ShapeDtypeStruct((M, E), jnp.float32),
        grid=(B,),
        in_specs=[
            pl.BlockSpec((S, E), lambda b: (b, 0)),      # x (per-batch row block)
            _full2d((1, E)), _full2d((1, E)),            # ln1 gamma/beta
            _full2d((E, 3 * E)), _full2d((1, 3 * E)),    # wqkv, bqkv
            _full2d((E, E)), _full2d((1, E)),            # wo, bo
            _full2d((1, E)), _full2d((1, E)),            # ln2 gamma/beta
            _full2d((E, F)), _full2d((1, F)),            # w1, b1
            _full2d((F, E)), _full2d((1, E)),            # w2, b2
        ],
        out_specs=pl.BlockSpec((S, E), lambda b: (b, 0)),
        compiler_params=pltpu.CompilerParams(dimension_semantics=("parallel",)),
    )(x2d, lp["ln1_g"], lp["ln1_b"], lp["wqkv"], lp["bqkv"], lp["wo"], lp["bo"],
      lp["ln2_g"], lp["ln2_b"], lp["w1"], lp["b1"], lp["w2"], lp["b2"])


def lm_head(x2d, gamma, beta, w, b, *, eps=1e-5, tm_cap=256, tn_cap=512):
    M, E = x2d.shape
    V = w.shape[1]
    # Lane-dense output tiles; fall back to full extent when small / not divisible.
    tm = tm_cap if (M > tm_cap and M % tm_cap == 0) else M
    tn = tn_cap if (V > tn_cap and V % tn_cap == 0) else V
    grid = (M // tm, V // tn)
    return pl.pallas_call(
        functools.partial(lm_head_kernel, eps=eps),
        out_shape=jax.ShapeDtypeStruct((M, V), jnp.float32),
        grid=grid,
        in_specs=[
            pl.BlockSpec((tm, E), lambda i, j: (i, 0)),
            pl.BlockSpec((1, E), lambda i, j: (0, 0)),
            pl.BlockSpec((1, E), lambda i, j: (0, 0)),
            pl.BlockSpec((E, tn), lambda i, j: (0, j)),
            pl.BlockSpec((1, tn), lambda i, j: (0, j)),
        ],
        out_specs=pl.BlockSpec((tm, tn), lambda i, j: (i, j)),
        compiler_params=pltpu.CompilerParams(
            dimension_semantics=("parallel", "parallel")),
    )(x2d, gamma, beta, w, b)


# ----------------------------------------------------------------------------
# Model: parameters + forward
# ----------------------------------------------------------------------------
def sinusoidal_pos_encoding(max_len, emb_dim):
    pos = jnp.arange(max_len, dtype=jnp.float32)[:, None]
    i = jnp.arange(emb_dim, dtype=jnp.float32)[None, :]
    angle = pos / jnp.power(10000.0, (2.0 * jnp.floor(i / 2.0)) / emb_dim)
    pe = jnp.where((jnp.arange(emb_dim) % 2) == 0, jnp.sin(angle), jnp.cos(angle))
    return pe.astype(jnp.float32)  # (max_len, emb_dim)


def init_params(key, vocab_size, n_layers, n_heads, emb_dim, ff_dim, max_len):
    keys = jax.random.split(key, 2 + n_layers)

    def w_init(k, shape):
        # Matmul weights are stored bf16 (f32 accumulation happens in-kernel).
        return (0.02 * jax.random.normal(k, shape, jnp.float32)).astype(jnp.bfloat16)

    params = {
        "word_emb": 0.02 * jax.random.normal(keys[0], (vocab_size, emb_dim), jnp.float32),
        "pos_enc": sinusoidal_pos_encoding(max_len, emb_dim),
        "ln_f_g": jnp.ones((1, emb_dim), jnp.float32),
        "ln_f_b": jnp.zeros((1, emb_dim), jnp.float32),
        # PyTorch Linear(emb, vocab) weight is (vocab, emb); stored transposed (emb, vocab).
        "head_w": w_init(keys[1], (emb_dim, vocab_size)),
        "head_b": jnp.zeros((1, vocab_size), jnp.float32),
        "layers": [],
    }
    for l in range(n_layers):
        ks = jax.random.split(keys[2 + l], 4)
        lp = {
            "ln1_g": jnp.ones((1, emb_dim), jnp.float32),
            "ln1_b": jnp.zeros((1, emb_dim), jnp.float32),
            "wqkv": w_init(ks[0], (emb_dim, 3 * emb_dim)),
            "bqkv": jnp.zeros((1, 3 * emb_dim), jnp.float32),
            "wo": w_init(ks[1], (emb_dim, emb_dim)),
            "bo": jnp.zeros((1, emb_dim), jnp.float32),
            "ln2_g": jnp.ones((1, emb_dim), jnp.float32),
            "ln2_b": jnp.zeros((1, emb_dim), jnp.float32),
            "w1": w_init(ks[2], (emb_dim, ff_dim)),
            "b1": jnp.zeros((1, ff_dim), jnp.float32),
            "w2": w_init(ks[3], (ff_dim, emb_dim)),
            "b2": jnp.zeros((1, emb_dim), jnp.float32),
        }
        params["layers"].append(lp)
    return params


def gazdanov_forward(params, tokens, n_heads):
    B, S = tokens.shape
    E = params["word_emb"].shape[1]
    V = params["head_w"].shape[1]
    # Embedding gather + positional encoding fused in one kernel. Dropout(p) -> identity.
    x = embed(tokens, params["word_emb"], params["pos_enc"])          # (B*S, E)
    for lp in params["layers"]:
        x = transformer_block(x, lp, B=B, S=S, H=n_heads)             # one kernel / layer
    logits = lm_head(x, params["ln_f_g"], params["ln_f_b"],
                     params["head_w"], params["head_b"])              # fused LN_f + head
    return logits.reshape(B, S, V)


# ----------------------------------------------------------------------------
# main
# ----------------------------------------------------------------------------
if __name__ == "__main__":
    # small config consistent with the module's __init__
    vocab_size, n_layers, n_heads, emb_dim, ff_dim, max_len = 64, 2, 4, 32, 64, 16
    batch, seq = 2, 8

    key = jax.random.PRNGKey(0)
    tok_key, param_key = jax.random.split(key)
    tokens = jax.random.randint(tok_key, (batch, seq), 0, vocab_size, dtype=jnp.int32)

    params = init_params(param_key, vocab_size, n_layers, n_heads, emb_dim, ff_dim, max_len)

    fwd = jax.jit(functools.partial(gazdanov_forward, n_heads=n_heads))
    logits = fwd(params, tokens)
    jax.block_until_ready(logits)

    assert logits.shape == (batch, seq, vocab_size)
    assert logits.dtype == jnp.float32
    assert bool(jnp.all(jnp.isfinite(logits)))
    print("KERNEL_OK")
</pallas_src>

<mosaic_0001>
module attributes {stable_mosaic.version = 11 : i64} {
  func.func @embed_kernel(%arg0: i32, %arg1: memref<16x1xi32, #tpu.memory_space<vmem>>, %arg2: memref<64x32xf32, #tpu.memory_space<vmem>>, %arg3: memref<8x32xf32, #tpu.memory_space<vmem>>, %arg4: memref<16x32xf32, #tpu.memory_space<vmem>>) attributes {dimension_semantics = [#tpu.dimension_semantics<arbitrary>], iteration_bounds = array<i64: 1>, scalar_prefetch = 0 : i64, scratch_operands = 0 : i64, tpu.core_type = #tpu.core_type<tc>, window_params = [{pipeline_mode = #tpu.pipeline_mode<synchronous>, transform_indices = @transform_0, window_bounds = array<i64: 16, 1>}, {pipeline_mode = #tpu.pipeline_mode<synchronous>, transform_indices = @transform_1, window_bounds = array<i64: 64, 32>}, {pipeline_mode = #tpu.pipeline_mode<synchronous>, transform_indices = @transform_2, window_bounds = array<i64: 8, 32>}, {pipeline_mode = #tpu.pipeline_mode<synchronous>, transform_indices = @transform_3, window_bounds = array<i64: 16, 32>}]} {
    %c0 = arith.constant 0 : index
    %c0_0 = arith.constant 0 : index
    %0 = vector.load %arg1[%c0, %c0_0] : memref<16x1xi32, #tpu.memory_space<vmem>>, vector<16x1xi32>
    %1 = tpu.iota {dimensions = array<i32: 1>} : vector<16x64xi32>
    %2 = vector.broadcast %0 : vector<16x1xi32> to vector<16x64xi32>
    %3 = arith.cmpi eq, %2, %1 : vector<16x64xi32>
    %4 = arith.extui %3 : vector<16x64xi1> to vector<16x64xi32>
    %5 = arith.sitofp %4 : vector<16x64xi32> to vector<16x64xf32>
    %c0_1 = arith.constant 0 : index
    %c0_2 = arith.constant 0 : index
    %6 = vector.load %arg2[%c0_1, %c0_2] : memref<64x32xf32, #tpu.memory_space<vmem>>, vector<64x32xf32>
    %cst = arith.constant dense<0.000000e+00> : vector<16x32xf32>
    %7 = tpu.matmul %5, %6, %cst {dimension_numbers = #tpu.dot_dimension_numbers<[1], [0], [0], [1], [0, 0, 1, 1], [], []>} : vector<16x64xf32>, vector<64x32xf32>, vector<16x32xf32> -> vector<16x32xf32>
    %c0_3 = arith.constant 0 : index
    %c0_4 = arith.constant 0 : index
    %8 = vector.load %arg3[%c0_3, %c0_4] : memref<8x32xf32, #tpu.memory_space<vmem>>, vector<8x32xf32>
    %9 = vector.extract_strided_slice %7 {offsets = [0, 0], sizes = [8, 32], strides = [1, 1]} : vector<16x32xf32> to vector<8x32xf32>
    %10 = arith.addf %9, %8 : vector<8x32xf32>
    %c0_5 = arith.constant 0 : index
    %c0_6 = arith.constant 0 : index
    %11 = vector.load %arg4[%c0_5, %c0_6] : memref<16x32xf32, #tpu.memory_space<vmem>>, vector<8x32xf32>
    tpu.vector_store %arg4[%c0_5, %c0_6], %10 {strides = array<i32>} : memref<16x32xf32, #tpu.memory_space<vmem>>, vector<8x32xf32>,
    %12 = vector.extract_strided_slice %7 {offsets = [8, 0], sizes = [8, 32], strides = [1, 1]} : vector<16x32xf32> to vector<8x32xf32>
    %13 = arith.addf %12, %8 : vector<8x32xf32>
    %c8 = arith.constant 8 : index
    %c0_7 = arith.constant 0 : index
    %14 = vector.load %arg4[%c8, %c0_7] : memref<16x32xf32, #tpu.memory_space<vmem>>, vector<8x32xf32>
    tpu.vector_store %arg4[%c8, %c0_7], %13 {strides = array<i32>} : memref<16x32xf32, #tpu.memory_space<vmem>>, vector<8x32xf32>,
    return
  }
  func.func @transform_0(%arg0: i32) -> (i32, i32) {
    %c0_i32 = arith.constant 0 : i32
    %c0_i32_0 = arith.constant 0 : i32
    %c0_i32_1 = arith.constant 0 : i32
    return %c0_i32, %c0_i32_0 : i32, i32
  }
  func.func @transform_1(%arg0: i32) -> (i32, i32) {
    %c0_i32 = arith.constant 0 : i32
    %c0_i32_0 = arith.constant 0 : i32
    %c0_i32_1 = arith.constant 0 : i32
    return %c0_i32, %c0_i32_0 : i32, i32
  }
  func.func @transform_2(%arg0: i32) -> (i32, i32) {
    %c0_i32 = arith.constant 0 : i32
    %c0_i32_0 = arith.constant 0 : i32
    %c0_i32_1 = arith.constant 0 : i32
    return %c0_i32, %c0_i32_0 : i32, i32
  }
  func.func @transform_3(%arg0: i32) -> (i32, i32) {
    %c0_i32 = arith.constant 0 : i32
    %c0_i32_0 = arith.constant 0 : i32
    %c0_i32_1 = arith.constant 0 : i32
    return %c0_i32, %c0_i32_0 : i32, i32
  }
}

module attributes {stable_mosaic.version = 11 : i64} {
  func.func @lm_head_kernel(%arg0: i32, %arg1: i32, %arg2: memref<16x32xf32, #tpu.memory_space<vmem>>, %arg3: memref<1x32xf32, #tpu.memory_space<vmem>>, %arg4: memref<1x32xf32, #tpu.memory_space<vmem>>, %arg5: memref<32x64xbf16, #tpu.memory_space<vmem>>, %arg6: memref<1x64xf32, #tpu.memory_space<vmem>>, %arg7: memref<16x64xf32, #tpu.memory_space<vmem>>) attributes {dimension_semantics = [#tpu.dimension_semantics<parallel>, #tpu.dimension_semantics<parallel>], iteration_bounds = array<i64: 1, 1>, scalar_prefetch = 0 : i64, scratch_operands = 0 : i64, tpu.core_type = #tpu.core_type<tc>, window_params = [{transform_indices = @transform_0, window_bounds = array<i64: 16, 32>}, {pipeline_mode = #tpu.pipeline_mode<synchronous>, transform_indices = @transform_1, window_bounds = array<i64: 1, 32>}, {pipeline_mode = #tpu.pipeline_mode<synchronous>, transform_indices = @transform_2, window_bounds = array<i64: 1, 32>}, {transform_indices = @transform_3, window_bounds = array<i64: 32, 64>}, {transform_indices = @transform_4, window_bounds = array<i64: 1, 64>}, {transform_indices = @transform_5, window_bounds = array<i64: 16, 64>}]} {
    %c0 = arith.constant 0 : index
    %c0_0 = arith.constant 0 : index
    %0 = vector.load %arg2[%c0, %c0_0] : memref<16x32xf32, #tpu.memory_space<vmem>>, vector<16x32xf32>
    %c0_1 = arith.constant 0 : index
    %c0_2 = arith.constant 0 : index
    %1 = vector.load %arg3[%c0_1, %c0_2] : memref<1x32xf32, #tpu.memory_space<vmem>>, vector<1x32xf32>
    %c0_3 = arith.constant 0 : index
    %c0_4 = arith.constant 0 : index
    %2 = vector.load %arg4[%c0_3, %c0_4] : memref<1x32xf32, #tpu.memory_space<vmem>>, vector<1x32xf32>
    %cst = arith.constant dense<0.000000e+00> : vector<16xf32>
    %3 = vector.multi_reduction <add>, %0, %cst [1] : vector<16x32xf32> to vector<16xf32>
    %4 = vector.shape_cast %3 : vector<16xf32> to vector<16x1xf32>
    %cst_5 = arith.constant 3.200000e+01 : f32
    %5 = vector.broadcast %cst_5 : f32 to vector<16x1xf32>
    %6 = arith.divf %4, %5 : vector<16x1xf32>
    %7 = vector.broadcast %6 : vector<16x1xf32> to vector<16x32xf32>
    %8 = arith.subf %0, %7 : vector<16x32xf32>
    %9 = vector.broadcast %6 : vector<16x1xf32> to vector<16x32xf32>
    %10 = arith.subf %0, %9 : vector<16x32xf32>
    %11 = arith.mulf %8, %10 : vector<16x32xf32>
    %cst_6 = arith.constant dense<0.000000e+00> : vector<16xf32>
    %12 = vector.multi_reduction <add>, %11, %cst_6 [1] : vector<16x32xf32> to vector<16xf32>
    %13 = vector.shape_cast %12 : vector<16xf32> to vector<16x1xf32>
    %cst_7 = arith.constant 3.200000e+01 : f32
    %14 = vector.broadcast %cst_7 : f32 to vector<16x1xf32>
    %15 = arith.divf %13, %14 : vector<16x1xf32>
    %16 = vector.broadcast %6 : vector<16x1xf32> to vector<16x32xf32>
    %17 = arith.subf %0, %16 : vector<16x32xf32>
    %cst_8 = arith.constant 9.99999974E-6 : f32
    %18 = vector.broadcast %cst_8 : f32 to vector<16x1xf32>
    %19 = arith.addf %15, %18 : vector<16x1xf32>
    %20 = math.rsqrt %19 : vector<16x1xf32>
    %21 = vector.broadcast %20 : vector<16x1xf32> to vector<16x32xf32>
    %22 = arith.mulf %17, %21 : vector<16x32xf32>
    %23 = vector.broadcast %1 : vector<1x32xf32> to vector<16x32xf32>
    %24 = arith.mulf %22, %23 : vector<16x32xf32>
    %25 = vector.broadcast %2 : vector<1x32xf32> to vector<16x32xf32>
    %26 = arith.addf %24, %25 : vector<16x32xf32>
    %27 = arith.truncf %26 : vector<16x32xf32> to vector<16x32xbf16>
    %c0_9 = arith.constant 0 : index
    %c0_10 = arith.constant 0 : index
    %28 = vector.load %arg5[%c0_9, %c0_10] : memref<32x64xbf16, #tpu.memory_space<vmem>>, vector<32x64xbf16>
    %cst_11 = arith.constant dense<0.000000e+00> : vector<16x64xf32>
    %29 = tpu.matmul %27, %28, %cst_11 {dimension_numbers = #tpu.dot_dimension_numbers<[1], [0], [0], [1], [0, 0, 1, 1], [], []>} : vector<16x32xbf16>, vector<32x64xbf16>, vector<16x64xf32> -> vector<16x64xf32>
    %c0_12 = arith.constant 0 : index
    %c0_13 = arith.constant 0 : index
    %30 = vector.load %arg6[%c0_12, %c0_13] : memref<1x64xf32, #tpu.memory_space<vmem>>, vector<1x64xf32>
    %31 = vector.broadcast %30 : vector<1x64xf32> to vector<16x64xf32>
    %32 = arith.addf %29, %31 : vector<16x64xf32>
    %c0_14 = arith.constant 0 : index
    %c0_15 = arith.constant 0 : index
    %33 = vector.load %arg7[%c0_14, %c0_15] : memref<16x64xf32, #tpu.memory_space<vmem>>, vector<16x64xf32>
    tpu.vector_store %arg7[%c0_14, %c0_15], %32 {strides = array<i32>} : memref<16x64xf32, #tpu.memory_space<vmem>>, vector<16x64xf32>,
    return
  }
  func.func @transform_0(%arg0: i32, %arg1: i32) -> (i32, i32) {
    %c0_i32 = arith.constant 0 : i32
    %c0_i32_0 = arith.constant 0 : i32
    return %arg0, %c0_i32 : i32, i32
  }
  func.func @transform_1(%arg0: i32, %arg1: i32) -> (i32, i32) {
    %c0_i32 = arith.constant 0 : i32
    %c0_i32_0 = arith.constant 0 : i32
    %c0_i32_1 = arith.constant 0 : i32
    return %c0_i32, %c0_i32_0 : i32, i32
  }
  func.func @transform_2(%arg0: i32, %arg1: i32) -> (i32, i32) {
    %c0_i32 = arith.constant 0 : i32
    %c0_i32_0 = arith.constant 0 : i32
    %c0_i32_1 = arith.constant 0 : i32
    return %c0_i32, %c0_i32_0 : i32, i32
  }
  func.func @transform_3(%arg0: i32, %arg1: i32) -> (i32, i32) {
    %c0_i32 = arith.constant 0 : i32
    %c0_i32_0 = arith.constant 0 : i32
    return %c0_i32, %arg1 : i32, i32
  }
  func.func @transform_4(%arg0: i32, %arg1: i32) -> (i32, i32) {
    %c0_i32 = arith.constant 0 : i32
    %c0_i32_0 = arith.constant 0 : i32
    return %c0_i32, %arg1 : i32, i32
  }
  func.func @transform_5(%arg0: i32, %arg1: i32) -> (i32, i32) {
    %c0_i32 = arith.constant 0 : i32
    return %arg0, %arg1 : i32, i32
  }
}

module attributes {stable_mosaic.version = 11 : i64} {
  func.func @block_kernel(%arg0: i32, %arg1: memref<8x32xf32, #tpu.memory_space<vmem>>, %arg2: memref<1x32xf32, #tpu.memory_space<vmem>>, %arg3: memref<1x32xf32, #tpu.memory_space<vmem>>, %arg4: memref<32x96xbf16, #tpu.memory_space<vmem>>, %arg5: memref<1x96xf32, #tpu.memory_space<vmem>>, %arg6: memref<32x32xbf16, #tpu.memory_space<vmem>>, %arg7: memref<1x32xf32, #tpu.memory_space<vmem>>, %arg8: memref<1x32xf32, #tpu.memory_space<vmem>>, %arg9: memref<1x32xf32, #tpu.memory_space<vmem>>, %arg10: memref<32x64xbf16, #tpu.memory_space<vmem>>, %arg11: memref<1x64xf32, #tpu.memory_space<vmem>>, %arg12: memref<64x32xbf16, #tpu.memory_space<vmem>>, %arg13: memref<1x32xf32, #tpu.memory_space<vmem>>, %arg14: memref<8x32xf32, #tpu.memory_space<vmem>>) attributes {dimension_semantics = [#tpu.dimension_semantics<parallel>], iteration_bounds = array<i64: 2>, scalar_prefetch = 0 : i64, scratch_operands = 0 : i64, tpu.core_type = #tpu.core_type<tc>, window_params = [{transform_indices = @transform_0, window_bounds = array<i64: 8, 32>}, {pipeline_mode = #tpu.pipeline_mode<synchronous>, transform_indices = @transform_1, window_bounds = array<i64: 1, 32>}, {pipeline_mode = #tpu.pipeline_mode<synchronous>, transform_indices = @transform_2, window_bounds = array<i64: 1, 32>}, {pipeline_mode = #tpu.pipeline_mode<synchronous>, transform_indices = @transform_3, window_bounds = array<i64: 32, 96>}, {pipeline_mode = #tpu.pipeline_mode<synchronous>, transform_indices = @transform_4, window_bounds = array<i64: 1, 96>}, {pipeline_mode = #tpu.pipeline_mode<synchronous>, transform_indices = @transform_5, window_bounds = array<i64: 32, 32>}, {pipeline_mode = #tpu.pipeline_mode<synchronous>, transform_indices = @transform_6, window_bounds = array<i64: 1, 32>}, {pipeline_mode = #tpu.pipeline_mode<synchronous>, transform_indices = @transform_7, window_bounds = array<i64: 1, 32>}, {pipeline_mode = #tpu.pipeline_mode<synchronous>, transform_indices = @transform_8, window_bounds = array<i64: 1, 32>}, {pipeline_mode = #tpu.pipeline_mode<synchronous>, transform_indices = @transform_9, window_bounds = array<i64: 32, 64>}, {pipeline_mode = #tpu.pipeline_mode<synchronous>, transform_indices = @transform_10, window_bounds = array<i64: 1, 64>}, {pipeline_mode = #tpu.pipeline_mode<synchronous>, transform_indices = @transform_11, window_bounds = array<i64: 64, 32>}, {pipeline_mode = #tpu.pipeline_mode<synchronous>, transform_indices = @transform_12, window_bounds = array<i64: 1, 32>}, {transform_indices = @transform_13, window_bounds = array<i64: 8, 32>}]} {
    %c0 = arith.constant 0 : index
    %c0_0 = arith.constant 0 : index
    %0 = vector.load %arg1[%c0, %c0_0] : memref<8x32xf32, #tpu.memory_space<vmem>>, vector<8x32xf32>
    %c0_1 = arith.constant 0 : index
    %c0_2 = arith.constant 0 : index
    %1 = vector.load %arg2[%c0_1, %c0_2] : memref<1x32xf32, #tpu.memory_space<vmem>>, vector<1x32xf32>
    %c0_3 = arith.constant 0 : index
    %c0_4 = arith.constant 0 : index
    %2 = vector.load %arg3[%c0_3, %c0_4] : memref<1x32xf32, #tpu.memory_space<vmem>>, vector<1x32xf32>
    %cst = arith.constant dense<0.000000e+00> : vector<8xf32>
    %3 = vector.multi_reduction <add>, %0, %cst [1] : vector<8x32xf32> to vector<8xf32>
    %4 = vector.shape_cast %3 : vector<8xf32> to vector<8x1xf32>
    %cst_5 = arith.constant 3.200000e+01 : f32
    %5 = vector.broadcast %cst_5 : f32 to vector<8x1xf32>
    %6 = arith.divf %4, %5 : vector<8x1xf32>
    %7 = vector.broadcast %6 : vector<8x1xf32> to vector<8x32xf32>
    %8 = arith.subf %0, %7 : vector<8x32xf32>
    %9 = vector.broadcast %6 : vector<8x1xf32> to vector<8x32xf32>
    %10 = arith.subf %0, %9 : vector<8x32xf32>
    %11 = arith.mulf %8, %10 : vector<8x32xf32>
    %cst_6 = arith.constant dense<0.000000e+00> : vector<8xf32>
    %12 = vector.multi_reduction <add>, %11, %cst_6 [1] : vector<8x32xf32> to vector<8xf32>
    %13 = vector.shape_cast %12 : vector<8xf32> to vector<8x1xf32>
    %cst_7 = arith.constant 3.200000e+01 : f32
    %14 = vector.broadcast %cst_7 : f32 to vector<8x1xf32>
    %15 = arith.divf %13, %14 : vector<8x1xf32>
    %16 = vector.broadcast %6 : vector<8x1xf32> to vector<8x32xf32>
    %17 = arith.subf %0, %16 : vector<8x32xf32>
    %cst_8 = arith.constant 9.99999974E-6 : f32
    %18 = vector.broadcast %cst_8 : f32 to vector<8x1xf32>
    %19 = arith.addf %15, %18 : vector<8x1xf32>
    %20 = math.rsqrt %19 : vector<8x1xf32>
    %21 = vector.broadcast %20 : vector<8x1xf32> to vector<8x32xf32>
    %22 = arith.mulf %17, %21 : vector<8x32xf32>
    %23 = vector.broadcast %1 : vector<1x32xf32> to vector<8x32xf32>
    %24 = arith.mulf %22, %23 : vector<8x32xf32>
    %25 = vector.broadcast %2 : vector<1x32xf32> to vector<8x32xf32>
    %26 = arith.addf %24, %25 : vector<8x32xf32>
    %27 = arith.truncf %26 : vector<8x32xf32> to vector<8x32xbf16>
    %c0_9 = arith.constant 0 : index
    %c0_10 = arith.constant 0 : index
    %28 = vector.load %arg4[%c0_9, %c0_10] : memref<32x96xbf16, #tpu.memory_space<vmem>>, vector<32x96xbf16>
    %cst_11 = arith.constant dense<0.000000e+00> : vector<8x96xf32>
    %29 = tpu.matmul %27, %28, %cst_11 {dimension_numbers = #tpu.dot_dimension_numbers<[1], [0], [0], [1], [0, 0, 1, 1], [], []>} : vector<8x32xbf16>, vector<32x96xbf16>, vector<8x96xf32> -> vector<8x96xf32>
    %c0_12 = arith.constant 0 : index
    %c0_13 = arith.constant 0 : index
    %30 = vector.load %arg5[%c0_12, %c0_13] : memref<1x96xf32, #tpu.memory_space<vmem>>, vector<1x96xf32>
    %31 = vector.broadcast %30 : vector<1x96xf32> to vector<8x96xf32>
    %32 = arith.addf %29, %31 : vector<8x96xf32>
    %33 = vector.extract_strided_slice %32 {offsets = [0, 0], sizes = [8, 32], strides = [1, 1]} : vector<8x96xf32> to vector<8x32xf32>
    %34 = vector.extract_strided_slice %32 {offsets = [0, 32], sizes = [8, 32], strides = [1, 1]} : vector<8x96xf32> to vector<8x32xf32>
    %35 = vector.extract_strided_slice %32 {offsets = [0, 64], sizes = [8, 32], strides = [1, 1]} : vector<8x96xf32> to vector<8x32xf32>
    %36 = tpu.iota {dimensions = array<i32: 0>} : vector<8x8xi32>
    %37 = tpu.iota {dimensions = array<i32: 1>} : vector<8x8xi32>
    %38 = arith.cmpi sle, %37, %36 : vector<8x8xi32>
    %39 = vector.extract_strided_slice %33 {offsets = [0, 0], sizes = [8, 8], strides = [1, 1]} : vector<8x32xf32> to vector<8x8xf32>
    %40 = arith.truncf %39 : vector<8x8xf32> to vector<8x8xbf16>
    %41 = vector.extract_strided_slice %34 {offsets = [0, 0], sizes = [8, 8], strides = [1, 1]} : vector<8x32xf32> to vector<8x8xf32>
    %42 = arith.truncf %41 : vector<8x8xf32> to vector<8x8xbf16>
    %43 = vector.extract_strided_slice %35 {offsets = [0, 0], sizes = [8, 8], strides = [1, 1]} : vector<8x32xf32> to vector<8x8xf32>
    %44 = arith.truncf %43 : vector<8x8xf32> to vector<8x8xbf16>
    %cst_14 = arith.constant dense<0.000000e+00> : vector<8x8xf32>
    %45 = tpu.matmul %40, %42, %cst_14 {dimension_numbers = #tpu.dot_dimension_numbers<[1], [1], [0], [0], [0, 0, 1, 0], [], []>} : vector<8x8xbf16>, vector<8x8xbf16>, vector<8x8xf32> -> vector<8x8xf32>
    %cst_15 = arith.constant 0.353553385 : f32
    %46 = vector.broadcast %cst_15 : f32 to vector<8x8xf32>
    %47 = arith.mulf %45, %46 : vector<8x8xf32>
    %cst_16 = arith.constant -1.000000e+30 : f32
    %48 = vector.broadcast %cst_16 : f32 to vector<8x8xf32>
    %49 = arith.select %38, %47, %48 : vector<8x8xi1>, vector<8x8xf32>
    %cst_17 = arith.constant dense<0xFF800000> : vector<8xf32>
    %50 = vector.multi_reduction <maximumf>, %49, %cst_17 [1] : vector<8x8xf32> to vector<8xf32>
    %51 = vector.shape_cast %50 : vector<8xf32> to vector<8x1xf32>
    %52 = vector.broadcast %51 : vector<8x1xf32> to vector<8x8xf32>
    %53 = arith.subf %49, %52 : vector<8x8xf32>
    %54 = math.exp %53 : vector<8x8xf32>
    %cst_18 = arith.constant dense<0.000000e+00> : vector<8xf32>
    %55 = vector.multi_reduction <add>, %54, %cst_18 [1] : vector<8x8xf32> to vector<8xf32>
    %56 = vector.shape_cast %55 : vector<8xf32> to vector<8x1xf32>
    %57 = arith.truncf %54 : vector<8x8xf32> to vector<8x8xbf16>
    %cst_19 = arith.constant dense<0.000000e+00> : vector<8x8xf32>
    %58 = tpu.matmul %57, %44, %cst_19 {dimension_numbers = #tpu.dot_dimension_numbers<[1], [0], [0], [1], [0, 0, 1, 1], [], []>} : vector<8x8xbf16>, vector<8x8xbf16>, vector<8x8xf32> -> vector<8x8xf32>
    %59 = tpu.reciprocal %56 {approx = true} : vector<8x1xf32> -> vector<8x1xf32>
    %60 = vector.broadcast %59 : vector<8x1xf32> to vector<8x8xf32>
    %61 = arith.mulf %58, %60 : vector<8x8xf32>
    %62 = vector.extract_strided_slice %33 {offsets = [0, 8], sizes = [8, 8], strides = [1, 1]} : vector<8x32xf32> to vector<8x8xf32>
    %63 = arith.truncf %62 : vector<8x8xf32> to vector<8x8xbf16>
    %64 = vector.extract_strided_slice %34 {offsets = [0, 8], sizes = [8, 8], strides = [1, 1]} : vector<8x32xf32> to vector<8x8xf32>
    %65 = arith.truncf %64 : vector<8x8xf32> to vector<8x8xbf16>
    %66 = vector.extract_strided_slice %35 {offsets = [0, 8], sizes = [8, 8], strides = [1, 1]} : vector<8x32xf32> to vector<8x8xf32>
    %67 = arith.truncf %66 : vector<8x8xf32> to vector<8x8xbf16>
    %cst_20 = arith.constant dense<0.000000e+00> : vector<8x8xf32>
    %68 = tpu.matmul %63, %65, %cst_20 {dimension_numbers = #tpu.dot_dimension_numbers<[1], [1], [0], [0], [0, 0, 1, 0], [], []>} : vector<8x8xbf16>, vector<8x8xbf16>, vector<8x8xf32> -> vector<8x8xf32>
    %cst_21 = arith.constant 0.353553385 : f32
    %69 = vector.broadcast %cst_21 : f32 to vector<8x8xf32>
    %70 = arith.mulf %68, %69 : vector<8x8xf32>
    %cst_22 = arith.constant -1.000000e+30 : f32
    %71 = vector.broadcast %cst_22 : f32 to vector<8x8xf32>
    %72 = arith.select %38, %70, %71 : vector<8x8xi1>, vector<8x8xf32>
    %cst_23 = arith.constant dense<0xFF800000> : vector<8xf32>
    %73 = vector.multi_reduction <maximumf>, %72, %cst_23 [1] : vector<8x8xf32> to vector<8xf32>
    %74 = vector.shape_cast %73 : vector<8xf32> to vector<8x1xf32>
    %75 = vector.broadcast %74 : vector<8x1xf32> to vector<8x8xf32>
    %76 = arith.subf %72, %75 : vector<8x8xf32>
    %77 = math.exp %76 : vector<8x8xf32>
    %cst_24 = arith.constant dense<0.000000e+00> : vector<8xf32>
    %78 = vector.multi_reduction <add>, %77, %cst_24 [1] : vector<8x8xf32> to vector<8xf32>
    %79 = vector.shape_cast %78 : vector<8xf32> to vector<8x1xf32>
    %80 = arith.truncf %77 : vector<8x8xf32> to vector<8x8xbf16>
    %cst_25 = arith.constant dense<0.000000e+00> : vector<8x8xf32>
    %81 = tpu.matmul %80, %67, %cst_25 {dimension_numbers = #tpu.dot_dimension_numbers<[1], [0], [0], [1], [0, 0, 1, 1], [], []>} : vector<8x8xbf16>, vector<8x8xbf16>, vector<8x8xf32> -> vector<8x8xf32>
    %82 = tpu.reciprocal %79 {approx = true} : vector<8x1xf32> -> vector<8x1xf32>
    %83 = vector.broadcast %82 : vector<8x1xf32> to vector<8x8xf32>
    %84 = arith.mulf %81, %83 : vector<8x8xf32>
    %85 = vector.extract_strided_slice %33 {offsets = [0, 16], sizes = [8, 8], strides = [1, 1]} : vector<8x32xf32> to vector<8x8xf32>
    %86 = arith.truncf %85 : vector<8x8xf32> to vector<8x8xbf16>
    %87 = vector.extract_strided_slice %34 {offsets = [0, 16], sizes = [8, 8], strides = [1, 1]} : vector<8x32xf32> to vector<8x8xf32>
    %88 = arith.truncf %87 : vector<8x8xf32> to vector<8x8xbf16>
    %89 = vector.extract_strided_slice %35 {offsets = [0, 16], sizes = [8, 8], strides = [1, 1]} : vector<8x32xf32> to vector<8x8xf32>
    %90 = arith.truncf %89 : vector<8x8xf32> to vector<8x8xbf16>
    %cst_26 = arith.constant dense<0.000000e+00> : vector<8x8xf32>
    %91 = tpu.matmul %86, %88, %cst_26 {dimension_numbers = #tpu.dot_dimension_numbers<[1], [1], [0], [0], [0, 0, 1, 0], [], []>} : vector<8x8xbf16>, vector<8x8xbf16>, vector<8x8xf32> -> vector<8x8xf32>
    %cst_27 = arith.constant 0.353553385 : f32
    %92 = vector.broadcast %cst_27 : f32 to vector<8x8xf32>
    %93 = arith.mulf %91, %92 : vector<8x8xf32>
    %cst_28 = arith.constant -1.000000e+30 : f32
    %94 = vector.broadcast %cst_28 : f32 to vector<8x8xf32>
    %95 = arith.select %38, %93, %94 : vector<8x8xi1>, vector<8x8xf32>
    %cst_29 = arith.constant dense<0xFF800000> : vector<8xf32>
    %96 = vector.multi_reduction <maximumf>, %95, %cst_29 [1] : vector<8x8xf32> to vector<8xf32>
    %97 = vector.shape_cast %96 : vector<8xf32> to vector<8x1xf32>
    %98 = vector.broadcast %97 : vector<8x1xf32> to vector<8x8xf32>
    %99 = arith.subf %95, %98 : vector<8x8xf32>
    %100 = math.exp %99 : vector<8x8xf32>
    %cst_30 = arith.constant dense<0.000000e+00> : vector<8xf32>
    %101 = vector.multi_reduction <add>, %100, %cst_30 [1] : vector<8x8xf32> to vector<8xf32>
    %102 = vector.shape_cast %101 : vector<8xf32> to vector<8x1xf32>
    %103 = arith.truncf %100 : vector<8x8xf32> to vector<8x8xbf16>
    %cst_31 = arith.constant dense<0.000000e+00> : vector<8x8xf32>
    %104 = tpu.matmul %103, %90, %cst_31 {dimension_numbers = #tpu.dot_dimension_numbers<[1], [0], [0], [1], [0, 0, 1, 1], [], []>} : vector<8x8xbf16>, vector<8x8xbf16>, vector<8x8xf32> -> vector<8x8xf32>
    %105 = tpu.reciprocal %102 {approx = true} : vector<8x1xf32> -> vector<8x1xf32>
    %106 = vector.broadcast %105 : vector<8x1xf32> to vector<8x8xf32>
    %107 = arith.mulf %104, %106 : vector<8x8xf32>
    %108 = vector.extract_strided_slice %33 {offsets = [0, 24], sizes = [8, 8], strides = [1, 1]} : vector<8x32xf32> to vector<8x8xf32>
    %109 = arith.truncf %108 : vector<8x8xf32> to vector<8x8xbf16>
    %110 = vector.extract_strided_slice %34 {offsets = [0, 24], sizes = [8, 8], strides = [1, 1]} : vector<8x32xf32> to vector<8x8xf32>
    %111 = arith.truncf %110 : vector<8x8xf32> to vector<8x8xbf16>
    %112 = vector.extract_strided_slice %35 {offsets = [0, 24], sizes = [8, 8], strides = [1, 1]} : vector<8x32xf32> to vector<8x8xf32>
    %113 = arith.truncf %112 : vector<8x8xf32> to vector<8x8xbf16>
    %cst_32 = arith.constant dense<0.000000e+00> : vector<8x8xf32>
    %114 = tpu.matmul %109, %111, %cst_32 {dimension_numbers = #tpu.dot_dimension_numbers<[1], [1], [0], [0], [0, 0, 1, 0], [], []>} : vector<8x8xbf16>, vector<8x8xbf16>, vector<8x8xf32> -> vector<8x8xf32>
    %cst_33 = arith.constant 0.353553385 : f32
    %115 = vector.broadcast %cst_33 : f32 to vector<8x8xf32>
    %116 = arith.mulf %114, %115 : vector<8x8xf32>
    %cst_34 = arith.constant -1.000000e+30 : f32
    %117 = vector.broadcast %cst_34 : f32 to vector<8x8xf32>
    %118 = arith.select %38, %116, %117 : vector<8x8xi1>, vector<8x8xf32>
    %cst_35 = arith.constant dense<0xFF800000> : vector<8xf32>
    %119 = vector.multi_reduction <maximumf>, %118, %cst_35 [1] : vector<8x8xf32> to vector<8xf32>
    %120 = vector.shape_cast %119 : vector<8xf32> to vector<8x1xf32>
    %121 = vector.broadcast %120 : vector<8x1xf32> to vector<8x8xf32>
    %122 = arith.subf %118, %121 : vector<8x8xf32>
    %123 = math.exp %122 : vector<8x8xf32>
    %cst_36 = arith.constant dense<0.000000e+00> : vector<8xf32>
    %124 = vector.multi_reduction <add>, %123, %cst_36 [1] : vector<8x8xf32> to vector<8xf32>
    %125 = vector.shape_cast %124 : vector<8xf32> to vector<8x1xf32>
    %126 = arith.truncf %123 : vector<8x8xf32> to vector<8x8xbf16>
    %cst_37 = arith.constant dense<0.000000e+00> : vector<8x8xf32>
    %127 = tpu.matmul %126, %113, %cst_37 {dimension_numbers = #tpu.dot_dimension_numbers<[1], [0], [0], [1], [0, 0, 1, 1], [], []>} : vector<8x8xbf16>, vector<8x8xbf16>, vector<8x8xf32> -> vector<8x8xf32>
    %128 = tpu.reciprocal %125 {approx = true} : vector<8x1xf32> -> vector<8x1xf32>
    %129 = vector.broadcast %128 : vector<8x1xf32> to vector<8x8xf32>
    %130 = arith.mulf %127, %129 : vector<8x8xf32>
    %131 = tpu.concatenate %61, %84, %107, %130 in 1 : vector<8x8xf32>, vector<8x8xf32>, vector<8x8xf32>, vector<8x8xf32> -> vector<8x32xf32>
    %132 = arith.truncf %131 : vector<8x32xf32> to vector<8x32xbf16>
    %c0_38 = arith.constant 0 : index
    %c0_39 = arith.constant 0 : index
    %133 = vector.load %arg6[%c0_38, %c0_39] : memref<32x32xbf16, #tpu.memory_space<vmem>>, vector<32x32xbf16>
    %cst_40 = arith.constant dense<0.000000e+00> : vector<8x32xf32>
    %134 = tpu.matmul %132, %133, %cst_40 {dimension_numbers = #tpu.dot_dimension_numbers<[1], [0], [0], [1], [0, 0, 1, 1], [], []>} : vector<8x32xbf16>, vector<32x32xbf16>, vector<8x32xf32> -> vector<8x32xf32>
    %c0_41 = arith.constant 0 : index
    %c0_42 = arith.constant 0 : index
    %135 = vector.load %arg7[%c0_41, %c0_42] : memref<1x32xf32, #tpu.memory_space<vmem>>, vector<1x32xf32>
    %136 = vector.broadcast %135 : vector<1x32xf32> to vector<8x32xf32>
    %137 = arith.addf %134, %136 : vector<8x32xf32>
    %138 = arith.addf %0, %137 : vector<8x32xf32>
    %c0_43 = arith.constant 0 : index
    %c0_44 = arith.constant 0 : index
    %139 = vector.load %arg8[%c0_43, %c0_44] : memref<1x32xf32, #tpu.memory_space<vmem>>, vector<1x32xf32>
    %c0_45 = arith.constant 0 : index
    %c0_46 = arith.constant 0 : index
    %140 = vector.load %arg9[%c0_45, %c0_46] : memref<1x32xf32, #tpu.memory_space<vmem>>, vector<1x32xf32>
    %cst_47 = arith.constant dense<0.000000e+00> : vector<8xf32>
    %141 = vector.multi_reduction <add>, %138, %cst_47 [1] : vector<8x32xf32> to vector<8xf32>
    %142 = vector.shape_cast %141 : vector<8xf32> to vector<8x1xf32>
    %cst_48 = arith.constant 3.200000e+01 : f32
    %143 = vector.broadcast %cst_48 : f32 to vector<8x1xf32>
    %144 = arith.divf %142, %143 : vector<8x1xf32>
    %145 = vector.broadcast %144 : vector<8x1xf32> to vector<8x32xf32>
    %146 = arith.subf %138, %145 : vector<8x32xf32>
    %147 = vector.broadcast %144 : vector<8x1xf32> to vector<8x32xf32>
    %148 = arith.subf %138, %147 : vector<8x32xf32>
    %149 = arith.mulf %146, %148 : vector<8x32xf32>
    %cst_49 = arith.constant dense<0.000000e+00> : vector<8xf32>
    %150 = vector.multi_reduction <add>, %149, %cst_49 [1] : vector<8x32xf32> to vector<8xf32>
    %151 = vector.shape_cast %150 : vector<8xf32> to vector<8x1xf32>
    %cst_50 = arith.constant 3.200000e+01 : f32
    %152 = vector.broadcast %cst_50 : f32 to vector<8x1xf32>
    %153 = arith.divf %151, %152 : vector<8x1xf32>
    %154 = vector.broadcast %144 : vector<8x1xf32> to vector<8x32xf32>
    %155 = arith.subf %138, %154 : vector<8x32xf32>
    %cst_51 = arith.constant 9.99999974E-6 : f32
    %156 = vector.broadcast %cst_51 : f32 to vector<8x1xf32>
    %157 = arith.addf %153, %156 : vector<8x1xf32>
    %158 = math.rsqrt %157 : vector<8x1xf32>
    %159 = vector.broadcast %158 : vector<8x1xf32> to vector<8x32xf32>
    %160 = arith.mulf %155, %159 : vector<8x32xf32>
    %161 = vector.broadcast %139 : vector<1x32xf32> to vector<8x32xf32>
    %162 = arith.mulf %160, %161 : vector<8x32xf32>
    %163 = vector.broadcast %140 : vector<1x32xf32> to vector<8x32xf32>
    %164 = arith.addf %162, %163 : vector<8x32xf32>
    %165 = arith.truncf %164 : vector<8x32xf32> to vector<8x32xbf16>
    %c0_52 = arith.constant 0 : index
    %c0_53 = arith.constant 0 : index
    %166 = vector.load %arg10[%c0_52, %c0_53] : memref<32x64xbf16, #tpu.memory_space<vmem>>, vector<32x64xbf16>
    %cst_54 = arith.constant dense<0.000000e+00> : vector<8x64xf32>
    %167 = tpu.matmul %165, %166, %cst_54 {dimension_numbers = #tpu.dot_dimension_numbers<[1], [0], [0], [1], [0, 0, 1, 1], [], []>} : vector<8x32xbf16>, vector<32x64xbf16>, vector<8x64xf32> -> vector<8x64xf32>
    %c0_55 = arith.constant 0 : index
    %c0_56 = arith.constant 0 : index
    %168 = vector.load %arg11[%c0_55, %c0_56] : memref<1x64xf32, #tpu.memory_space<vmem>>, vector<1x64xf32>
    %169 = vector.broadcast %168 : vector<1x64xf32> to vector<8x64xf32>
    %170 = arith.addf %167, %169 : vector<8x64xf32>
    %cst_57 = arith.constant 5.000000e-01 : f32
    %171 = vector.broadcast %cst_57 : f32 to vector<8x64xf32>
    %172 = arith.mulf %171, %170 : vector<8x64xf32>
    %cst_58 = arith.constant 4.471500e-02 : f32
    %173 = vector.broadcast %cst_58 : f32 to vector<8x64xf32>
    %174 = arith.mulf %173, %170 : vector<8x64xf32>
    %175 = arith.mulf %174, %170 : vector<8x64xf32>
    %176 = arith.mulf %175, %170 : vector<8x64xf32>
    %177 = arith.addf %170, %176 : vector<8x64xf32>
    %cst_59 = arith.constant 0.797884583 : f32
    %178 = vector.broadcast %cst_59 : f32 to vector<8x64xf32>
    %179 = arith.mulf %178, %177 : vector<8x64xf32>
    %180 = math.tanh %179 : vector<8x64xf32>
    %cst_60 = arith.constant 1.000000e+00 : f32
    %181 = vector.broadcast %cst_60 : f32 to vector<8x64xf32>
    %182 = arith.addf %181, %180 : vector<8x64xf32>
    %183 = arith.mulf %172, %182 : vector<8x64xf32>
    %184 = arith.truncf %183 : vector<8x64xf32> to vector<8x64xbf16>
    %c0_61 = arith.constant 0 : index
    %c0_62 = arith.constant 0 : index
    %185 = vector.load %arg12[%c0_61, %c0_62] : memref<64x32xbf16, #tpu.memory_space<vmem>>, vector<64x32xbf16>
    %cst_63 = arith.constant dense<0.000000e+00> : vector<8x32xf32>
    %186 = tpu.matmul %184, %185, %cst_63 {dimension_numbers = #tpu.dot_dimension_numbers<[1], [0], [0], [1], [0, 0, 1, 1], [], []>} : vector<8x64xbf16>, vector<64x32xbf16>, vector<8x32xf32> -> vector<8x32xf32>
    %c0_64 = arith.constant 0 : index
    %c0_65 = arith.constant 0 : index
    %187 = vector.load %arg13[%c0_64, %c0_65] : memref<1x32xf32, #tpu.memory_space<vmem>>, vector<1x32xf32>
    %188 = vector.broadcast %187 : vector<1x32xf32> to vector<8x32xf32>
    %189 = arith.addf %186, %188 : vector<8x32xf32>
    %190 = arith.addf %138, %189 : vector<8x32xf32>
    %c0_66 = arith.constant 0 : index
    %c0_67 = arith.constant 0 : index
    %191 = vector.load %arg14[%c0_66, %c0_67] : memref<8x32xf32, #tpu.memory_space<vmem>>, vector<8x32xf32>
    tpu.vector_store %arg14[%c0_66, %c0_67], %190 {strides = array<i32>} : memref<8x32xf32, #tpu.memory_space<vmem>>, vector<8x32xf32>,
    return
  }
  func.func @transform_0(%arg0: i32) -> (i32, i32) {
    %c0_i32 = arith.constant 0 : i32
    %c0_i32_0 = arith.constant 0 : i32
    return %arg0, %c0_i32 : i32, i32
  }
  func.func @transform_1(%arg0: i32) -> (i32, i32) {
    %c0_i32 = arith.constant 0 : i32
    %c0_i32_0 = arith.constant 0 : i32
    %c0_i32_1 = arith.constant 0 : i32
    return %c0_i32, %c0_i32_0 : i32, i32
  }
  func.func @transform_2(%arg0: i32) -> (i32, i32) {
    %c0_i32 = arith.constant 0 : i32
    %c0_i32_0 = arith.constant 0 : i32
    %c0_i32_1 = arith.constant 0 : i32
    return %c0_i32, %c0_i32_0 : i32, i32
  }
  func.func @transform_3(%arg0: i32) -> (i32, i32) {
    %c0_i32 = arith.constant 0 : i32
    %c0_i32_0 = arith.constant 0 : i32
    %c0_i32_1 = arith.constant 0 : i32
    return %c0_i32, %c0_i32_0 : i32, i32
  }
  func.func @transform_4(%arg0: i32) -> (i32, i32) {
    %c0_i32 = arith.constant 0 : i32
    %c0_i32_0 = arith.constant 0 : i32
    %c0_i32_1 = arith.constant 0 : i32
    return %c0_i32, %c0_i32_0 : i32, i32
  }
  func.func @transform_5(%arg0: i32) -> (i32, i32) {
    %c0_i32 = arith.constant 0 : i32
    %c0_i32_0 = arith.constant 0 : i32
    %c0_i32_1 = arith.constant 0 : i32
    return %c0_i32, %c0_i32_0 : i32, i32
  }
  func.func @transform_6(%arg0: i32) -> (i32, i32) {
    %c0_i32 = arith.constant 0 : i32
    %c0_i32_0 = arith.constant 0 : i32
    %c0_i32_1 = arith.constant 0 : i32
    return %c0_i32, %c0_i32_0 : i32, i32
  }
  func.func @transform_7(%arg0: i32) -> (i32, i32) {
    %c0_i32 = arith.constant 0 : i32
    %c0_i32_0 = arith.constant 0 : i32
    %c0_i32_1 = arith.constant 0 : i32
    return %c0_i32, %c0_i32_0 : i32, i32
  }
  func.func @transform_8(%arg0: i32) -> (i32, i32) {
    %c0_i32 = arith.constant 0 : i32
    %c0_i32_0 = arith.constant 0 : i32
    %c0_i32_1 = arith.constant 0 : i32
    return %c0_i32, %c0_i32_0 : i32, i32
  }
  func.func @transform_9(%arg0: i32) -> (i32, i32) {
    %c0_i32 = arith.constant 0 : i32
    %c0_i32_0 = arith.constant 0 : i32
    %c0_i32_1 = arith.constant 0 : i32
    return %c0_i32, %c0_i32_0 : i32, i32
  }
  func.func @transform_10(%arg0: i32) -> (i32, i32) {
    %c0_i32 = arith.constant 0 : i32
    %c0_i32_0 = arith.constant 0 : i32
    %c0_i32_1 = arith.constant 0 : i32
    return %c0_i32, %c0_i32_0 : i32, i32
  }
  func.func @transform_11(%arg0: i32) -> (i32, i32) {
    %c0_i32 = arith.constant 0 : i32
    %c0_i32_0 = arith.constant 0 : i32
    %c0_i32_1 = arith.constant 0 : i32
    return %c0_i32, %c0_i32_0 : i32, i32
  }
  func.func @transform_12(%arg0: i32) -> (i32, i32) {
    %c0_i32 = arith.constant 0 : i32
    %c0_i32_0 = arith.constant 0 : i32
    %c0_i32_1 = arith.constant 0 : i32
    return %c0_i32, %c0_i32_0 : i32, i32
  }
  func.func @transform_13(%arg0: i32) -> (i32, i32) {
    %c0_i32 = arith.constant 0 : i32
    %c0_i32_0 = arith.constant 0 : i32
    return %arg0, %c0_i32 : i32, i32
  }
}

</mosaic_0001>

<bundles_post_ra>
// kernel: gazdanov_forward.7
= control target key start
LH: loop header
LB: loop body
LE: loop exit
PB: predicated region body
PF: predicated region fallthrough
CT: control target
= control target key end

     0   :  { %vm26_vm0 = vcmask 261120   ;;  %s271_s0 = inlined_call_operand.vmem [shape: f32[16,32], index: 0, kind: input, shape index: {}]   ;;  %s272_s1 = inlined_call_operand.vmem [shape: f32[1,32], index: 1, kind: input, shape index: {}]   ;;  %s273_s2 = inlined_call_operand.vmem [shape: f32[1,32], index: 2, kind: input, shape index: {}]   ;;  %s274_s3 = inlined_call_operand.vmem [shape: bf16[32,64], index: 3, kind: input, shape index: {}]   ;;  %s275_s4 = inlined_call_operand.vmem [shape: f32[1,64], index: 4, kind: input, shape index: {}]   ;;  %s276_s5 = inlined_call_operand.hbm [shape: f32[16,64], index: 5, kind: output, shape index: {}]  }
   0x1   :  { %v22_v0 = vld [vmem:[%s271_s0] sm:$0xff]  ;;  %v23_v1 = vld [vmem:[%s271_s0 + $0x8] sm:$0xff] }
   0x2   :  { %v27_v2 = vsel %vm26_vm0, %v22_v0, 0.0 }
   0x3   :  { %28 = vadd.xlane.f32.xlu0 %v27_v2 }
   0x4   :  { %10 = vsyncpa [#allocation3], 0  ;;  %v30_v3 = vsel %vm26_vm0, %v23_v1, 0.0  ;;  %v179_v14 = vld [vmem:[%s274_s3 + $0x8] sm:$0xff]   ;;  %v207_v15 = vmov 0.0   ;;  %vm208_vm1 = vmmov 0  }
   0x5   :  { %166 = vmatprep.subr.bf16.mxu0 %v207_v15  ;;  %170 = vmatprep.mubr.msk.bf16.mxu0 %vm208_vm1, %v207_v15  ;;  %v180_v16 = vld [vmem:[%s274_s3] sm:$0xff]   ;;  %vm138_vm2 = vcmask 523264  }
   0x6   :  { %167 = vmatpush3.bf16.msra.mxu0 %v179_v14  ;;  %v157_v25 = vld [vmem:[%s272_s1] ss:$0 sm:$0xff]  ;;  %s209_s1 = smov [#allocation2]  }
   0x7   :  { %31 = vadd.xlane.f32.xlu0 %v30_v3  ;;  %168 = vmatprep.subr.bf16.mxu0 %v207_v15  ;;  %v158_v29 = vld [vmem:[%s273_s2] ss:$0 sm:$0xff]  ;;  %s146_s30 = sshll.u32 %s209_s1, 4  ;;  %s147_s30 = int_to_ptr.vmem [resolvable:$true] %s146_s30 }
   0x8   :  { %v159_v34 = vld [vmem:[%s275_s4] ss:$0 sm:$0xff]  ;;  %s185_s2 = scalar_lea.vmem %s147_s30, 256  ;;  %p190_p1 = scmp.lt.s32.totalorder %s147_s30, %s147_s30 }
   0x9   :  { %p186_p0 = scmp.ne.s32.totalorder %s147_s30, %s185_s2  ;;  %p191_p2 = scmp.lt.s32.totalorder %s185_s2, %s185_s2 }
   0xa   :  { %169 = vmatpush3.bf16.msra.mxu0 %v180_v16 }
   0xb   :  { %p192_p3 = por %p191_p2, %p190_p1 }
   0xd   :  { %p193_p4 = pnand %p192_p3, %p186_p0 }
  0x8c   :  { %v29_v4 = vpop.xlane.xlu0 %28 }
  0x8d   :  { %v34_v5 = vmul.f32 0.03125, %v29_v4 }
  0x8f   :  { %v36_v6 = vsub.f32 %v22_v0, %v34_v5 }
  0x90   :  { %v32_v7 = vpop.xlane.xlu0 %31 }
  0x91   :  { %v35_v8 = vmul.f32 0.03125, %v32_v7  ;;  %v38_v9 = vmul.f32 %v36_v6, %v36_v6 }
  0x93   :  { %v37_v10 = vsub.f32 %v23_v1, %v35_v8  ;;  %v40_v11 = vsel %vm26_vm0, %v38_v9, 0.0 }
  0x94   :  { %41 = vadd.xlane.f32.xlu1 %v40_v11 }
  0x95   :  { %v39_v12 = vmul.f32 %v37_v10, %v37_v10 }
  0x97   :  { %v43_v13 = vsel %vm26_vm0, %v39_v12, 0.0 }
  0x98   :  { %44 = vadd.xlane.f32.xlu1 %v43_v13 }
 0x11d   :  { %v42_v17 = vpop.xlane.xlu1 %41 }
 0x11e   :  { %v46_v18 = vmul.f32 0.03125, %v42_v17 }
 0x120   :  { %v48_v19 = vadd.f32 1e-05, %v46_v18 }
 0x121   :  { %v45_v20 = vpop.xlane.xlu1 %44 }
 0x122   :  { %181 = vrsqrt.f32 %v48_v19  ;;  %v47_v21 = vmul.f32 0.03125, %v45_v20 }
 0x124   :  { %v49_v22 = vadd.f32 1e-05, %v47_v21 }
 0x126   :  { %183 = vrsqrt.f32 %v49_v22 }
 0x12f   :  { %v182_v23 = vpop.eup %181 }
 0x130   :  { %v52_v24 = vmul.f32 %v182_v23, %v36_v6 }
 0x132   :  { %v60_v28 = vmul.f32 %v157_v25, %v52_v24 }
 0x133   :  { %v184_v26 = vpop.eup %183 }
 0x134   :  { %v53_v27 = vmul.f32 %v184_v26, %v37_v10  ;;  %v68_v31 = vadd.f32 %v158_v29, %v60_v28 }
 0x136   :  { %v61_v30 = vmul.f32 %v157_v25, %v53_v27 }
 0x138   :  { %v69_v32 = vadd.f32 %v158_v29, %v61_v30 }
 0x13a   :  { %v70_v33 = vpack.c.bf16 %v69_v32, %v68_v31 }
 0x13c   :  { %171 = vmatmul.mubr.msk.bf16.vlgmr.msra.gmra.mxu0 %vm26_vm0, %v70_v33 }
 0x1fc   :  { %v131_v35 = vpop.f32.mrf.mxu0 }
 0x1fd   :  { %v132_v36 = vadd.f32 %v159_v34, %v131_v35 }
 0x1fe   :  { %v172_v37 = vpop.f32.mrf.mxu0 }
 0x1ff   :  { %139 = vst.msk [vmem:[#allocation2] sm:$0xff] %vm138_vm2, %v132_v36 }
 0x200   :  { %v134_v38 = vpop.f32.mrf.mxu0 }
 0x201   :  { %v135_v39 = vadd.f32 %v159_v34, %v134_v38 }
 0x202   :  { %v173_v40 = vpop.f32.mrf.mxu0 }
 0x203   :  { %140 = vst.msk [vmem:[#allocation2 + $0x8] sm:$0xff] %vm138_vm2, %v135_v39 }
 0x204   :  { %196 = shalt.err (!%p193_p4)
}
 0x205   :  { %s210_s4 = smov 128   ;;  %s211_s6 = smov 8  }
 0x206   :  { %152 = dma.vmem_to_hbm [thread:$0]  %s147_s30, 256, %s276_s5, [#allocation3], %s210_s4, %s210_s4, %s211_s6  }
 0x207   :  { %205 = dma.done.wait [#allocation3], 256  }
 0x208   :  { %206 = vsyncadd [#allocation3], 4294967040 }
 0x209   :  { %156 = vsyncpa [#allocation3], 1 }

// kernel: gazdanov_forward.4
= control target key start
LH: loop header
LB: loop body
LE: loop exit
PB: predicated region body
PF: predicated region fallthrough
CT: control target
= control target key end

     0   :  { %v166_v0 = vmov 0   ;;  %v16_v11 = vlaneseq  ;;  %vm38_vm0 = vcmask 523264   ;;  %v167_v14 = vmov 0.0   ;;  %s227_s0 = inlined_call_operand.vmem [shape: s32[16,1], index: 0, kind: input, shape index: {}]   ;;  %s228_s1 = inlined_call_operand.vmem [shape: f32[64,32], index: 1, kind: input, shape index: {}]   ;;  %s229_s2 = inlined_call_operand.vmem [shape: f32[8,32], index: 2, kind: input, shape index: {}]   ;;  %s230_s3 = inlined_call_operand.vmem [shape: f32[16,32], index: 3, kind: output, shape index: {}]  }
   0x1   :  { %165 = vset.pattern.permute.xlu0 %v166_v0  ;;  %v14_v1 = vld [vmem:[%s227_s0] sm:$0xff]  ;;  %v37_v2 = vld [vmem:[%s228_s1 + $0x38] sm:$0xff]  ;;  %v36_v3 = vld [vmem:[%s228_s1 + $0x30] sm:$0xff]  ;;  %vm122_vm3 = vcmask 261120  }
   0x2   :  { %19 = vperm.xlu0 %165, %v14_v1   ;;  %144 = vmatprep.subr.mxu0 %v37_v2  ;;  %v15_v4 = vld [vmem:[%s227_s0 + $0x8] sm:$0xff]  ;;  %v34_v6 = vld [vmem:[%s228_s1 + $0x20] sm:$0xff]  ;;  %v33_v7 = vld [vmem:[%s228_s1 + $0x18] sm:$0xff]  ;;  %v17_v12 = vand.u32 127, %v16_v11 }
   0x3   :  { %145 = vmatpush3.msra.mxu0 %v37_v2  ;;  %v35_v5 = vld [vmem:[%s228_s1 + $0x28] sm:$0xff]  ;;  %v32_v8 = vld [vmem:[%s228_s1 + $0x10] sm:$0xff]  ;;  %v30_v10 = vld [vmem:[%s228_s1] sm:$0xff] }
   0x4   :  { %146 = vmatprep.subr.mxu0 %v36_v3  ;;  %v31_v9 = vld [vmem:[%s228_s1 + $0x8] sm:$0xff]  ;;  %v120_v18 = vld [vmem:[%s229_s2] sm:$0xff] }
   0x5   :  { %147 = vmatpush3.msra.mxu0 %v36_v3 }
   0x6   :  { %22 = vperm.xlu0 %165, %v15_v4   ;;  %148 = vmatprep.subr.mxu0 %v35_v5 }
   0x7   :  { %149 = vmatpush3.msra.mxu0 %v35_v5 }
   0x8   :  { %150 = vmatprep.subr.mxu0 %v34_v6 }
   0x9   :  { %151 = vmatpush3.msra.mxu0 %v34_v6 }
   0xa   :  { %152 = vmatprep.subr.mxu0 %v33_v7 }
   0xb   :  { %153 = vmatpush3.msra.mxu0 %v33_v7 }
   0xc   :  { %154 = vmatprep.subr.mxu0 %v32_v8 }
   0xd   :  { %155 = vmatpush3.msra.mxu0 %v32_v8 }
   0xe   :  { %156 = vmatprep.subr.mxu0 %v31_v9 }
   0xf   :  { %157 = vmatpush3.msra.mxu0 %v31_v9 }
  0x10   :  { %158 = vmatprep.subr.mxu0 %v30_v10 }
  0x11   :  { %159 = vmatpush3.msra.mxu0 %v30_v10 }
  0x7d   :  { %v20_v13 = vpop.permute.xlu0 %19 }
  0x7e   :  { %vm24_vm1 = vcmp.eq.s32.totalorder %v20_v13, %v17_v12 }
  0x7f   :  { %v130_v15 = vsel %vm24_vm1, 1.0, %v167_v14 }
  0x80   :  { %160 = vmatprep.mubr.msk.f32.mxu0 %vm38_vm0, %v130_v15 }
  0x81   :  { %v23_v16 = vpop.permute.xlu0 %22 }
  0x82   :  { %vm25_vm2 = vcmp.eq.s32.totalorder %v23_v16, %v17_v12 }
  0x83   :  { %v131_v17 = vsel %vm25_vm2, 1.0, %v167_v14 }
  0x84   :  { %161 = vmatmul.mubr.msk.f32.vlgmr.msra.gmra.mxu0 %vm38_vm0, %v131_v17 }
 0x144   :  { %v162_v19 = vpop.f32.mrf.mxu0 }
 0x145   :  { %v124_v20 = vadd.f32 %v162_v19, %v120_v18 }
 0x146   :  { %v111_v21 = vpop.f32.mrf.mxu0 }
 0x147   :  { %125 = vst.msk [vmem:[%s230_s3 + $0x8] sm:$0xff] %vm122_vm3, %v124_v20  ;;  %v121_v22 = vadd.f32 %v120_v18, %v111_v21 }
 0x149   :  { %123 = vst.msk [vmem:[%s230_s3] sm:$0xff] %vm122_vm3, %v121_v22 }

// kernel: gazdanov_forward.5
= control target key start
LH: loop header
LB: loop body
LE: loop exit
PB: predicated region body
PF: predicated region fallthrough
CT: control target
= control target key end

     0   :  { %s1623_s25 = smov 0   ;;  %s1804_s0 = inlined_call_operand.vmem [shape: f32[16,32], index: 0, kind: input, shape index: {}]   ;;  %s1805_s1 = inlined_call_operand.vmem [shape: f32[1,32], index: 1, kind: input, shape index: {}]   ;;  %s1806_s2 = inlined_call_operand.vmem [shape: f32[1,32], index: 2, kind: input, shape index: {}]   ;;  %s1807_s3 = inlined_call_operand.vmem [shape: bf16[32,96], index: 3, kind: input, shape index: {}]   ;;  %s1808_s4 = inlined_call_operand.vmem [shape: f32[1,96], index: 4, kind: input, shape index: {}]   ;;  %s1809_s5 = inlined_call_operand.vmem [shape: bf16[32,32], index: 5, kind: input, shape index: {}]   ;;  %s1810_s6 = inlined_call_operand.vmem [shape: f32[1,32], index: 6, kind: input, shape index: {}]   ;;  %s1811_s7 = inlined_call_operand.vmem [shape: f32[1,32], index: 7, kind: input, shape index: {}]   ;;  %s1812_s8 = inlined_call_operand.vmem [shape: f32[1,32], index: 8, kind: input, shape index: {}]   ;;  %s1813_s9 = inlined_call_operand.vmem [shape: bf16[32,64], index: 9, kind: input, shape index: {}]   ;;  %s1814_s10 = inlined_call_operand.vmem [shape: f32[1,64], index: 10, kind: input, shape index: {}]   ;;  %s1815_s11 = inlined_call_operand.vmem [shape: bf16[64,32], index: 11, kind: input, shape index: {}]   ;;  %s1816_s12 = inlined_call_operand.vmem [shape: f32[1,32], index: 12, kind: input, shape index: {}]   ;;  %s1817_s13 = inlined_call_operand.vmem [shape: f32[16,32], index: 13, kind: output, shape index: {}]  }
   0x1 LB: > { %s1320_s26 = sadd.s32 4294967295, %s1535_s25   ;;  %p1324_p0 = scmp.ge.s32.totalorder %s1535_s25, 1  ;;  %s1535_s25 = sphi %s1623_s25, %s23_s25  }
   0x2   : > { %p386_p1 = scmp.lt.s32.totalorder %s1535_s25, 3 }
   0x4   : > { %p387_p2 = pnand %p1324_p0, %p386_p1 }
   0x5   : > { %p428_p3 = scmp.lt.s32.totalorder (!%p387_p2), %s1320_s26, 1  ;;  %s1539_s24 = smov (!%p387_p2), 120  }
   0x6   : > { %390 = sbr.rel (%p387_p2) target bundleno = 2305 (0x901), region = 72  ;;  %s1540_s28 = smov (!%p387_p2), 96  }
   0x7   : > { %s1541_s29 = smov (!%p387_p2), 88   ;;  %s1543_s14 = smov (!%p387_p2), 112  }
   0x8   : > { %s1544_s15 = smov (!%p387_p2), 72   ;;  %s1545_s16 = smov (!%p387_p2), 104  }
   0x9   : > { %s1546_s17 = smov (!%p387_p2), 64   ;;  %s1547_s18 = smov (!%p387_p2), 56  }
   0xa   : > { %s1548_s19 = smov (!%p387_p2), 48   ;;  %s1549_s20 = smov (!%p387_p2), 40  }
   0xb   : > { %s1819_s26 = smov (!%p428_p3, %s1320_s26), 1  ;;  %vm440_vm0 = vcmask 261120   ;;  %v1497_v7 = vld [vmem:[%s1807_s3 + $0x8] sm:$0xff]   ;;  %v1537_v8 = vmov 0.0   ;;  %vm1538_vm1 = vmmov 0   ;;  %v1498_v9 = vld [vmem:[%s1807_s3] sm:$0xff]   ;;  %v536_v38 = vlaneseq }
   0xc   : > { %s1325_s27 = sshll.u32 %s1819_s26, 3  ;;  %1389 = vmatprep.subr.bf16.mxu0 %v1537_v8  ;;  %1393 = vmatprep.mubr.msk.bf16.mxu0 %vm1538_vm1, %v1537_v8  ;;  %v1327_v14 = vld [vmem:[%s1805_s1] ss:$0 sm:$0xff]  ;;  %vm545_vm2 = vcmask 64512   ;;  %vm609_vm4 = vcmask 1043456   ;;  %s1550_s21 = smov 8  }
   0xd   : > { %s431_s30 = scalar_lea.vmem %s1804_s0, %s1325_s27  ;;  %1390 = vmatpush3.bf16.msra.mxu0 %v1497_v7  ;;  %1397 = vmatprep.subr.bf16.mxu1 %v1537_v8  ;;  %v1328_v16 = vld [vmem:[%s1806_s2] ss:$0 sm:$0xff]  ;;  %v537_v39 = vshrl.u32 %v536_v38, 7  ;;  %v539_v40 = vand.u32 127, %v536_v38  ;;  %vm1004_vm5 = vcmask 130048   ;;  %vm1006_vm6 = vcmask 195584  }
   0xe   : > { %v1639_v0 = vld [vmem:[%s431_s30] sm:$0xff]  ;;  %1391 = vmatprep.subr.bf16.mxu0 %v1537_v8  ;;  %1399 = vmatprep.mubr.msk.bf16.mxu1 %vm1538_vm1, %v1537_v8  ;;  %s1542_s30 = smov 80   ;;  %vm1221_vm7 = vcmask 523264  }
   0xf   : > { %v441_v1 = vsel %vm440_vm0, %v1639_v0, 0.0  ;;  %v1329_v20 = vld [vmem:[%s1808_s4] ss:$0 sm:$0xff]  ;;  %vm540_vm3 = vcmp.le.s32.totalorder %v539_v40, %v537_v39 }
  0x10   : > { %442 = vadd.xlane.f32.xlu0 %v441_v1 }
  0x11   : > { %1392 = vmatpush3.bf16.msra.mxu0 %v1498_v9 }
  0x12   : > { %1403 = vmatprep.subr.bf16.mxu0 %v1537_v8 }
  0x99   : > { %v443_v2 = vpop.xlane.xlu0 %442 }
  0x9a   : > { %v445_v3 = vmul.f32 0.03125, %v443_v2 }
  0x9c   : > { %v446_v4 = vsub.f32 %v1639_v0, %v445_v3 }
  0x9e   : > { %v447_v5 = vmul.f32 %v446_v4, %v446_v4 }
  0xa0   : > { %v448_v6 = vsel %vm440_vm0, %v447_v5, 0.0 }
  0xa1   : > { %449 = vadd.xlane.f32.xlu0 %v448_v6 }
 0x12a   : > { %v450_v10 = vpop.xlane.xlu0 %449 }
 0x12b   : > { %v451_v11 = vmul.f32 0.03125, %v450_v10 }
 0x12d   : > { %v452_v12 = vadd.f32 1e-05, %v451_v11 }
 0x12f   : > { %1507 = vrsqrt.f32 %v452_v12 }
 0x13c   : > { %v1508_v13 = vpop.eup %1507 }
 0x13d   : > { %v454_v15 = vmul.f32 %v1508_v13, %v446_v4 }
 0x13f   : > { %v461_v17 = vmul.f32 %v1327_v14, %v454_v15 }
 0x141   : > { %v468_v18 = vadd.f32 %v1328_v16, %v461_v17 }
 0x143   : > { %v469_v19 = vpack.c.bf16 %v468_v18, %v468_v18 }
 0x145   : > { %1394 = vmatmul.mubr.msk.bf16.vlgmr.msra.gmra.mxu0 %vm440_vm0, %v469_v19 }
 0x146   : > { %1405 = vmatprep.mubr.msk.bf16.mxu0 %vm1538_vm1, %v1537_v8 }
 0x205   : > { %v530_v21 = vpop.f32.mrf.mxu0 }
 0x206   : > { %v531_v22 = vadd.f32 %v1329_v20, %v530_v21 }
 0x207   : > { %v1395_v23 = vpop.f32.mrf.mxu0 }
 0x208   : > { %v1671_v24 = vpack.c.bf16 %v531_v22, %v531_v22 }
 0x209   : > { %v533_v25 = vpop.f32.mrf.mxu0 }
 0x20a   : > { %655 = vrot.lane.b32.xlu0 %v1671_v24, %s1539_s24  ;;  %543 = vrot.lane.b32.xlu1 %v1671_v24, %s1540_s28  ;;  %s435_s24 = scalar_lea.vmem %s1817_s13, %s1325_s27 }
 0x20b   : > { %v1396_v26 = vpop.f32.mrf.mxu0 }
 0x20e   : > { %657 = vrot.lane.b32.xlu1 %v1671_v24, %s1541_s29  ;;  %s1551_s29 = smov 16  }
 0x212   : > { %769 = vrot.lane.b32.xlu1 %v1671_v24, %s1542_s30  ;;  %s1552_s30 = smov 24  }
 0x216   : > { %767 = vrot.lane.b32.xlu1 %v1671_v24, %s1543_s14 }
 0x21a   : > { %881 = vrot.lane.b32.xlu1 %v1671_v24, %s1544_s15 }
 0x21e   : > { %879 = vrot.lane.b32.xlu1 %v1671_v24, %s1545_s16 }
 0x27c   : > { %v544_v27 = vpop.permute.xlu1 %543  ;;  %v656_v32 = vpop.permute.xlu0 %655 }
 0x27d   : > { %v550_v28 = vsel %vm545_vm2, %v544_v27, 0 }
 0x27e   : > { %1398 = vmatpush3.bf16.xpose.msra.mxu1 %v550_v28 }
 0x27f   : > { %1409 = vmatprep.subr.bf16.mxu1 %v1537_v8 }
 0x280   : > { %v658_v29 = vpop.permute.xlu1 %657 }
 0x281   : > { %v663_v30 = vsel %vm545_vm2, %v658_v29, 0 }
 0x284   : > { %v770_v31 = vpop.permute.xlu1 %769 }
 0x285   : > { %1400 = vmatmul.mubr.msk.bf16.vlgmr.msra.gmra.mxu1 %vm545_vm2, %v1671_v24  ;;  %v775_v34 = vsel %vm545_vm2, %v770_v31, 0 }
 0x286   : > { %1410 = vmatpush3.bf16.xpose.msra.mxu1 %v663_v30  ;;  %1411 = vmatprep.mubr.msk.bf16.mxu1 %vm1538_vm1, %v1537_v8 }
 0x287   : > { %1421 = vmatprep.subr.bf16.mxu1 %v1537_v8 }
 0x288   : > { %v768_v33 = vpop.permute.xlu1 %767 }
 0x28c   : > { %v882_v35 = vpop.permute.xlu1 %881 }
 0x28d   : > { %1412 = vmatmul.mubr.msk.bf16.vlgmr.msra.gmra.mxu1 %vm545_vm2, %v656_v32  ;;  %v887_v36 = vsel %vm545_vm2, %v882_v35, 0 }
 0x28e   : > { %1422 = vmatpush3.bf16.xpose.msra.mxu1 %v775_v34  ;;  %1423 = vmatprep.mubr.msk.bf16.mxu1 %vm1538_vm1, %v1537_v8 }
 0x28f   : > { %1433 = vmatprep.subr.bf16.mxu1 %v1537_v8 }
 0x290   : > { %v880_v37 = vpop.permute.xlu1 %879 }
 0x295   : > { %1424 = vmatmul.mubr.msk.bf16.vlgmr.msra.gmra.mxu1 %vm545_vm2, %v768_v33 }
 0x296   : > { %1434 = vmatpush3.bf16.xpose.msra.mxu1 %v887_v36  ;;  %1435 = vmatprep.mubr.msk.bf16.mxu1 %vm1538_vm1, %v1537_v8 }
 0x297   : > { %1445 = vmatprep.subr.bf16.mxu1 %v1537_v8 }
 0x29d   : > { %1436 = vmatmul.mubr.msk.bf16.vlgmr.msra.gmra.mxu1 %vm545_vm2, %v880_v37 }
 0x29e   : > { %1449 = vmatprep.mubr.msk.bf16.mxu1 %vm1538_vm1, %v1537_v8 }
 0x345   : > { %v586_v41 = vpop.f32.mrf.mxu1 }
 0x346   : > { %v592_v42 = vmul.f32 0.35355338, %v586_v41 }
 0x347   : > { %v1401_v43 = vpop.f32.mrf.mxu1 }
 0x348   : > { %v593_v44 = vsel %vm540_vm3, %v592_v42, -1e+30 }
 0x349   : > { %v589_v45 = vpop.f32.mrf.mxu1  ;;  %v594_v46 = vsel %vm545_vm2, %v593_v44, -inf }
 0x34a   : > { %595 = vmax.xlane.f32.xlu1 %v594_v46 }
 0x34b   : > { %v1402_v47 = vpop.f32.mrf.mxu1 }
 0x34d   : > { %v699_v48 = vpop.f32.mrf.mxu1 }
 0x34e   : > { %v705_v49 = vmul.f32 0.35355338, %v699_v48 }
 0x34f   : > { %v1413_v50 = vpop.f32.mrf.mxu1 }
 0x350   : > { %v706_v51 = vsel %vm540_vm3, %v705_v49, -1e+30 }
 0x351   : > { %v702_v52 = vpop.f32.mrf.mxu1  ;;  %v707_v53 = vsel %vm545_vm2, %v706_v51, -inf }
 0x352   : > { %708 = vmax.xlane.f32.xlu0 %v707_v53  ;;  %v1500_v53 = vld [vmem:[%s1809_s5] sm:$0xff]  }
 0x353   : > { %v1414_v54 = vpop.f32.mrf.mxu1 }
 0x355   : > { %v811_v55 = vpop.f32.mrf.mxu1 }
 0x356   : > { %v817_v3 = vmul.f32 0.35355338, %v811_v55 }
 0x357   : > { %v1425_v56 = vpop.f32.mrf.mxu1 }
 0x358   : > { %v818_v4 = vsel %vm540_vm3, %v817_v3, -1e+30 }
 0x359   : > { %v814_v57 = vpop.f32.mrf.mxu1  ;;  %v819_v5 = vsel %vm545_vm2, %v818_v4, -inf }
 0x35b   : > { %604 = vrot.lane.b32.xlu1 %v1671_v24, %s1546_s17  ;;  %v1426_v58 = vpop.f32.mrf.mxu1 }
 0x35d   : > { %v923_v59 = vpop.f32.mrf.mxu1 }
 0x35e   : > { %v929_v60 = vmul.f32 0.35355338, %v923_v59 }
 0x35f   : > { %v1437_v61 = vpop.f32.mrf.mxu1 }
 0x360   : > { %v930_v62 = vsel %vm540_vm3, %v929_v60, -1e+30 }
 0x361   : > { %v926_v63 = vpop.f32.mrf.mxu1  ;;  %v931_v1 = vsel %vm545_vm2, %v930_v62, -inf }
 0x362   : > { %932 = vmax.xlane.f32.xlu0 %v931_v1 }
 0x363   : > { %v1438_v2 = vpop.f32.mrf.mxu1 }
 0x378   : > { %717 = vrot.lane.b32.xlu0 %v1671_v24, %s1547_s18 }
 0x37f   : > { %820 = vmax.xlane.f32.xlu1 %v819_v5 }
 0x390   : > { %829 = vrot.lane.b32.xlu1 %v1671_v24, %s1548_s19 }
 0x394   : > { %941 = vrot.lane.b32.xlu1 %v1671_v24, %s1549_s20 }
 0x3d3   : > { %v596_v6 = vpop.xlane.xlu1 %595 }
 0x3d4   : > { %v597_v7 = vsub.f32 %v593_v44, %v596_v6 }
 0x3d6   : > { %v598_v9 = vmul.f32 1.442695, %v597_v7 }
 0x3d7   : > { %v605_v10 = vpop.permute.xlu1 %604 }
 0x3d8   : > { %1509 = vpow2.f32 %v598_v9  ;;  %v611_v11 = vsel %vm609_vm4, %v605_v10, 0 }
 0x3d9   : > { %1404 = vmatpush3.bf16.msra.mxu0 %v611_v11 }
 0x3da   : > { %1415 = vmatprep.subr.bf16.mxu0 %v1537_v8 }
 0x3db   : > { %v709_v12 = vpop.xlane.xlu0 %708 }
 0x3dc   : > { %v710_v13 = vsub.f32 %v706_v51, %v709_v12  ;;  %v1499_v51 = vld [vmem:[%s1809_s5 + $0x8] sm:$0xff]  }
 0x3dd   : > { %1446 = vmatpush3.bf16.msra.mxu1 %v1499_v51 }
 0x3de   : > { %v711_v14 = vmul.f32 1.442695, %v710_v13  ;;  %1447 = vmatprep.subr.bf16.mxu1 %v1537_v8 }
 0x3e0   : > { %1511 = vpow2.f32 %v711_v14  ;;  %v1341_v14 = vld [vmem:[%s1810_s6] ss:$0 sm:$0xff] }
 0x3e1   : > { %1448 = vmatpush3.bf16.msra.mxu1 %v1500_v53 }
 0x3e2   : > { %1461 = vmatprep.subr.bf16.mxu1 %v1537_v8 }
 0x3e5   : > { %v1510_v15 = vpop.eup %1509 }
 0x3e6   : > { %v603_v16 = vpack.c.bf16 %v1510_v15, %v1510_v15  ;;  %v600_v27 = vsel %vm545_vm2, %v1510_v15, 0.0 }
 0x3e8   : > { %1406 = vmatmul.mubr.msk.bf16.vlgmr.msra.gmra.mxu0 %vm545_vm2, %v603_v16 }
 0x3e9   : > { %1417 = vmatprep.mubr.msk.bf16.mxu0 %vm1538_vm1, %v1537_v8 }
 0x3eb   : > { %v933_v17 = vpop.xlane.xlu0 %932 }
 0x3ec   : > { %v934_v18 = vsub.f32 %v930_v62, %v933_v17 }
 0x3ed   : > { %v1512_v19 = vpop.eup %1511 }
 0x3ee   : > { %v935_v20 = vmul.f32 1.442695, %v934_v18  ;;  %v713_v21 = vsel %vm545_vm2, %v1512_v19, 0.0  ;;  %v716_v24 = vpack.c.bf16 %v1512_v19, %v1512_v19 }
 0x3ef   : > { %714 = vadd.xlane.f32.xlu0 %v713_v21  ;;  %v718_v22 = vpop.permute.xlu0 %717 }
 0x3f0   : > { %1513 = vpow2.f32 %v935_v20  ;;  %v723_v23 = vsel %vm609_vm4, %v718_v22, 0 }
 0x3f1   : > { %1416 = vmatpush3.bf16.msra.mxu0 %v723_v23 }
 0x3f2   : > { %1427 = vmatprep.subr.bf16.mxu0 %v1537_v8 }
 0x3f4   : > { %1418 = vmatmul.mubr.msk.bf16.vlgmr.msra.gmra.mxu0 %vm545_vm2, %v716_v24 }
 0x3f5   : > { %1429 = vmatprep.mubr.msk.bf16.mxu0 %vm1538_vm1, %v1537_v8 }
 0x3fd   : > { %v1514_v25 = vpop.eup %1513 }
 0x3fe   : > { %v937_v26 = vsel %vm545_vm2, %v1514_v25, 0.0  ;;  %v940_v38 = vpack.c.bf16 %v1514_v25, %v1514_v25 }
 0x3ff   : > { %938 = vadd.xlane.f32.xlu0 %v937_v26 }
 0x403   : > { %601 = vadd.xlane.f32.xlu0 %v600_v27  ;;  %v1501_v27 = vld [vmem:[%s1813_s9 + $0x8] sm:$0xff]  }
 0x408   : > { %v821_v28 = vpop.xlane.xlu1 %820 }
 0x409   : > { %v822_v29 = vsub.f32 %v818_v4, %v821_v28 }
 0x40b   : > { %v823_v30 = vmul.f32 1.442695, %v822_v29 }
 0x40c   : > { %v830_v31 = vpop.permute.xlu1 %829 }
 0x40d   : > { %1515 = vpow2.f32 %v823_v30  ;;  %v835_v32 = vsel %vm609_vm4, %v830_v31, 0 }
 0x40e   : > { %1428 = vmatpush3.bf16.msra.mxu0 %v835_v32  ;;  %v1345_v32 = vld [vmem:[%s1811_s7] ss:$0 sm:$0xff] }
 0x40f   : > { %1439 = vmatprep.subr.bf16.mxu0 %v1537_v8 }
 0x410   : > { %v942_v34 = vpop.permute.xlu1 %941 }
 0x411   : > { %v947_v37 = vsel %vm609_vm4, %v942_v34, 0  ;;  %v1346_v34 = vld [vmem:[%s1812_s8] ss:$0 sm:$0xff] }
 0x41a   : > { %v1516_v33 = vpop.eup %1515 }
 0x41b   : > { %v825_v35 = vsel %vm545_vm2, %v1516_v33, 0.0  ;;  %v828_v36 = vpack.c.bf16 %v1516_v33, %v1516_v33 }
 0x41c   : > { %826 = vadd.xlane.f32.xlu1 %v825_v35 }
 0x41d   : > { %1430 = vmatmul.mubr.msk.bf16.vlgmr.msra.gmra.mxu0 %vm545_vm2, %v828_v36 }
 0x41e   : > { %1440 = vmatpush3.bf16.msra.mxu0 %v947_v37  ;;  %1441 = vmatprep.mubr.msk.bf16.mxu0 %vm1538_vm1, %v1537_v8 }
 0x41f   : > { %1453 = vmatprep.subr.bf16.mxu0 %v1537_v8 }
 0x425   : > { %1442 = vmatmul.mubr.msk.bf16.vlgmr.msra.gmra.mxu0 %vm545_vm2, %v940_v38  ;;  %v1503_v38 = vld [vmem:[%s1815_s11 + $0x18] sm:$0xff]  }
 0x426   : > { %1457 = vmatprep.mubr.msk.bf16.mxu0 %vm1538_vm1, %v1537_v8  ;;  %1454 = vmatpush3.bf16.msra.mxu0 %v1501_v27 }
 0x427   : > { %1455 = vmatprep.subr.bf16.mxu0 %v1537_v8 }
 0x478   : > { %v715_v39 = vpop.xlane.xlu0 %714 }
 0x479   : > { %1517 = vrcp.f32 %v715_v39  ;;  %v1504_v39 = vld [vmem:[%s1815_s11 + $0x10] sm:$0xff]  }
 0x486   : > { %v1518_v44 = vpop.eup %1517 }
 0x488   : > { %v939_v52 = vpop.xlane.xlu0 %938 }
 0x48c   : > { %v602_v3 = vpop.xlane.xlu0 %601 }
 0x4a5   : > { %v827_v50 = vpop.xlane.xlu1 %826 }
 0x4a6   : > { %1519 = vrcp.f32 %v827_v50 }
 0x4a7   : > { %1521 = vrcp.f32 %v939_v52 }
 0x4a8   : > { %v647_v40 = vpop.f32.mrf.mxu0  ;;  %1523 = vrcp.f32 %v602_v3 }
 0x4aa   : > { %v1407_v41 = vpop.f32.mrf.mxu0 }
 0x4ab   : > { %v1506_v41 = vld [vmem:[%s1815_s11] sm:$0xff]  }
 0x4ac   : > { %v650_v42 = vpop.f32.mrf.mxu0 }
 0x4ad   : > { %v1347_v42 = vld [vmem:[%s1814_s10] ss:$0 sm:$0xff] }
 0x4ae   : > { %v1408_v43 = vpop.f32.mrf.mxu0 }
 0x4b3   : > { %v1520_v54 = vpop.eup %1519 }
 0x4b4   : > { %v759_v45 = vpop.f32.mrf.mxu0  ;;  %v1522_v60 = vpop.eup %1521 }
 0x4b5   : > { %v766_v46 = vmul.f32 %v1518_v44, %v759_v45  ;;  %v1524_v4 = vpop.eup %1523 }
 0x4b6   : > { %v1419_v47 = vpop.f32.mrf.mxu0  ;;  %v654_v6 = vmul.f32 %v1524_v4, %v647_v40  ;;  %v1505_v40 = vld [vmem:[%s1815_s11 + $0x8] sm:$0xff]  }
 0x4b7   : > { %992 = vrot.lane.b32.xlu1 %v766_v46, %s1550_s21 }
 0x4b8   : > { %v762_v48 = vpop.f32.mrf.mxu0 }
 0x4ba   : > { %v1420_v49 = vpop.f32.mrf.mxu0 }
 0x4dd   : > { %v871_v55 = vpop.f32.mrf.mxu0 }
 0x4de   : > { %v878_v56 = vmul.f32 %v1520_v54, %v871_v55 }
 0x4df   : > { %v1431_v57 = vpop.f32.mrf.mxu0 }
 0x4e0   : > { %996 = vrot.lane.b32.xlu0 %v878_v56, %s1551_s29  ;;  %v1351_v57 = vld [vmem:[%s1816_s12] ss:$0 sm:$0xff] }
 0x4e1   : > { %v874_v58 = vpop.f32.mrf.mxu0 }
 0x4e3   : > { %v1432_v59 = vpop.f32.mrf.mxu0 }
 0x4e5   : > { %v983_v61 = vpop.f32.mrf.mxu0 }
 0x4e6   : > { %v990_v62 = vmul.f32 %v1522_v60, %v983_v61 }
 0x4e7   : > { %v1443_v63 = vpop.f32.mrf.mxu0 }
 0x4e8   : > { %1000 = vrot.lane.b32.xlu1 %v990_v62, %s1552_s30 }
 0x4e9   : > { %v986_v1 = vpop.f32.mrf.mxu0 }
 0x4eb   : > { %v1444_v2 = vpop.f32.mrf.mxu0 }
 0x529   : > { %v993_v5 = vpop.permute.xlu1 %992 }
 0x52a   : > { %v1003_v9 = vsel %vm545_vm2, %v654_v6, %v993_v5 }
 0x552   : > { %v997_v7 = vpop.permute.xlu0 %996 }
 0x553   : > { %v1005_v10 = vsel %vm1004_vm5, %v1003_v9, %v997_v7 }
 0x55a   : > { %v1001_v11 = vpop.permute.xlu1 %1000 }
 0x55b   : > { %v1007_v12 = vsel %vm1006_vm6, %v1005_v10, %v1001_v11 }
 0x55c   : > { %v1008_v13 = vpack.c.bf16 %v1007_v12, %v1007_v12 }
 0x55e   : > { %1450 = vmatmul.mubr.msk.bf16.vlgmr.msra.gmra.mxu1 %vm440_vm0, %v1008_v13 }
 0x55f   : > { %1469 = vmatprep.mubr.msk.bf16.mxu1 %vm1538_vm1, %v1537_v8  ;;  %1462 = vmatpush3.bf16.msra.mxu1 %v1503_v38 }
 0x560   : > { %1463 = vmatprep.subr.bf16.mxu1 %v1537_v8 }
 0x563   : > { %1464 = vmatpush3.bf16.msra.mxu1 %v1504_v39 }
 0x564   : > { %1465 = vmatprep.subr.bf16.mxu1 %v1537_v8 }
 0x567   : > { %1466 = vmatpush3.bf16.msra.mxu1 %v1505_v40 }
 0x568   : > { %1467 = vmatprep.subr.bf16.mxu1 %v1537_v8 }
 0x56b   : > { %1468 = vmatpush3.bf16.msra.mxu1 %v1506_v41 }
 0x61e   : > { %v1069_v15 = vpop.f32.mrf.mxu1 }
 0x61f   : > { %v1070_v16 = vadd.f32 %v1341_v14, %v1069_v15 }
 0x620   : > { %v1451_v17 = vpop.f32.mrf.mxu1 }
 0x621   : > { %v1753_v18 = vadd.f32 %v1070_v16, %v1639_v0  ;;  %v1502_v0 = vld [vmem:[%s1813_s9] sm:$0xff]  }
 0x622   : > { %v1072_v19 = vpop.f32.mrf.mxu1  ;;  %1456 = vmatpush3.bf16.msra.mxu0 %v1502_v0 }
 0x623   : > { %v1078_v20 = vsel %vm440_vm0, %v1753_v18, 0.0 }
 0x624   : > { %1079 = vadd.xlane.f32.xlu1 %v1078_v20  ;;  %v1452_v21 = vpop.f32.mrf.mxu1 }
 0x6ad   : > { %v1080_v22 = vpop.xlane.xlu1 %1079 }
 0x6ae   : > { %v1081_v23 = vmul.f32 0.03125, %v1080_v22 }
 0x6b0   : > { %v1082_v24 = vsub.f32 %v1753_v18, %v1081_v23 }
 0x6b2   : > { %v1083_v25 = vmul.f32 %v1082_v24, %v1082_v24 }
 0x6b4   : > { %v1084_v26 = vsel %vm440_vm0, %v1083_v25, 0.0 }
 0x6b5   : > { %1085 = vadd.xlane.f32.xlu0 %v1084_v26 }
 0x73e   : > { %v1086_v28 = vpop.xlane.xlu0 %1085 }
 0x73f   : > { %v1087_v29 = vmul.f32 0.03125, %v1086_v28 }
 0x741   : > { %v1088_v30 = vadd.f32 1e-05, %v1087_v29 }
 0x743   : > { %1525 = vrsqrt.f32 %v1088_v30 }
 0x750   : > { %v1526_v31 = vpop.eup %1525 }
 0x751   : > { %v1090_v33 = vmul.f32 %v1526_v31, %v1082_v24 }
 0x753   : > { %v1097_v35 = vmul.f32 %v1345_v32, %v1090_v33 }
 0x755   : > { %v1104_v36 = vadd.f32 %v1346_v34, %v1097_v35 }
 0x757   : > { %v1105_v37 = vpack.c.bf16 %v1104_v36, %v1104_v36 }
 0x759   : > { %1458 = vmatmul.mubr.msk.bf16.vlgmr.msra.gmra.mxu0 %vm440_vm0, %v1105_v37 }
 0x819   : > { %v1166_v43 = vpop.f32.mrf.mxu0 }
 0x81a   : > { %v1167_v44 = vadd.f32 %v1347_v42, %v1166_v43 }
 0x81b   : > { %v1459_v45 = vpop.f32.mrf.mxu0 }
 0x81c   : > { %v1173_v46 = vmul.f32 0.044715, %v1167_v44  ;;  %v1172_v54 = vmul.f32 0.5, %v1167_v44 }
 0x81d   : > { %v1169_v47 = vpop.f32.mrf.mxu0 }
 0x81e   : > { %v1174_v48 = vmul.f32 %v1173_v46, %v1167_v44 }
 0x81f   : > { %v1460_v49 = vpop.f32.mrf.mxu0 }
 0x820   : > { %v1175_v50 = vmul.f32 %v1174_v48, %v1167_v44 }
 0x822   : > { %v1176_v51 = vadd.f32 %v1175_v50, %v1167_v44 }
 0x824   : > { %v1177_v52 = vmul.f32 0.7978846, %v1176_v51 }
 0x826   : > { %1527 = vtanh.f32 %v1177_v52 }
 0x833   : > { %v1528_v53 = vpop.eup %1527 }
 0x834   : > { %v1179_v8 = vadd.f32 1.0, %v1528_v53 }
 0x836   : > { %v1180_v55 = vmul.f32 %v1179_v8, %v1172_v54 }
 0x838   : > { %v1181_v56 = vpack.c.bf16 %v1180_v55, %v1180_v55 }
 0x83a   : > { %1470 = vmatmul.mubr.msk.bf16.vlgmr.msra.gmra.mxu1 %vm1221_vm7, %v1181_v56 }
 0x8fa   : > { %v1259_v58 = vpop.f32.mrf.mxu1 }
 0x8fb   : > { %v1260_v59 = vadd.f32 %v1351_v57, %v1259_v58 }
 0x8fc   : > { %v1471_v60 = vpop.f32.mrf.mxu1 }
 0x8fd   : > { %v1265_v61 = vadd.f32 %v1260_v59, %v1753_v18 }
 0x8fe   : > { %v1262_v62 = vpop.f32.mrf.mxu1 }
 0x8ff   : > { %1266 = vst.msk [vmem:[%s435_s24] sm:$0xff] %vm440_vm0, %v1265_v61 }
 0x900   : > { %v1472_v63 = vpop.f32.mrf.mxu1 }
 0x901 PF: > { %s23_s25 = sadd.s32 1, %s1535_s25  }
 0x902   : > { %p20_p4 = scmp.ge.s32.totalorder %s23_s25, 4  }
 0x904   :  { %22 = sbr.rel (!%p20_p4) target bundleno = 1 (0x1), region = 102 }

</bundles_post_ra>
